<compile_context>
chip_gen: v5e
topology: v5e:2x2
jax: 0.10.0
libtpu: 0.0.40
codegen_flags: <defaults>
</compile_context>

<pallas_src>
import functools

import jax
import jax.numpy as jnp
from jax.experimental import pallas as pl
from jax.experimental.pallas import tpu as pltpu


# ---------------------------------------------------------------------------
# Kernel
# ---------------------------------------------------------------------------
def _gnn_kernel(a_in_ref, a_out_ref, h0_ref,
                w_in_ref, b_in_ref,
                w_out_ref, b_out_ref,
                w_ih_in_ref, w_ih_out_ref, b_ih_ref,
                w_hh_ref, b_hh_ref,
                out_ref, *, step, matmul_dtype):
    f32 = jnp.float32
    md = matmul_dtype

    bt, n_nodes, hp = h0_ref.shape          # (b_tile, N, Hp)
    m_rows = bt * n_nodes

    # Adjacency halves (already split in the wrapper -> no lane slicing here).
    a_in = a_in_ref[...].astype(md)          # (bt, N, N)
    a_out = a_out_ref[...].astype(md)        # (bt, N, N)

    # Weights are VMEM-resident (constant index maps) and read once per tile.
    w_in = w_in_ref[...].astype(md)          # (Hp, Hp)
    b_in = b_in_ref[...]                     # (1, Hp)
    w_out = w_out_ref[...].astype(md)        # (Hp, Hp)
    b_out = b_out_ref[...]                   # (1, Hp)
    w_ih_in = w_ih_in_ref[...].astype(md)    # (Hp, 3Hp)
    w_ih_out = w_ih_out_ref[...].astype(md)  # (Hp, 3Hp)
    b_ih = b_ih_ref[...]                     # (1, 3Hp) -- b_iah/b_oah already folded in
    w_hh = w_hh_ref[...].astype(md)          # (Hp, 3Hp)
    b_hh = b_hh_ref[...]                     # (1, 3Hp)

    # Stack the b_tile graphs along the row (sublane/M) dimension.
    h2 = h0_ref[...].reshape(m_rows, hp).astype(f32)

    # `step` is a small static int -> unrolled Python loop.
    for _ in range(step):
        hm = h2.astype(md)

        # linear_edge_in / linear_edge_out on the stacked rows (MXU, M = bt*N).
        edge_in = jnp.dot(hm, w_in, preferred_element_type=f32) + b_in
        edge_out = jnp.dot(hm, w_out, preferred_element_type=f32) + b_out

        # Per-graph adjacency mixing (small batched matmuls).
        input_in = jnp.einsum(
            "bnm,bmh->bnh", a_in, edge_in.reshape(bt, n_nodes, hp).astype(md),
            preferred_element_type=f32).reshape(m_rows, hp)
        input_out = jnp.einsum(
            "bnm,bmh->bnh", a_out, edge_out.reshape(bt, n_nodes, hp).astype(md),
            preferred_element_type=f32).reshape(m_rows, hp)

        # GRU gates: two K=Hp matmuls replace concat([in, out]) @ w_ih.
        gi = (jnp.dot(input_in.astype(md), w_ih_in, preferred_element_type=f32)
              + jnp.dot(input_out.astype(md), w_ih_out, preferred_element_type=f32)
              + b_ih)
        gh = jnp.dot(hm, w_hh, preferred_element_type=f32) + b_hh

        # Hp is a multiple of 128 -> these lane slices are tile-aligned (no relayout).
        i_r, i_i, i_n = gi[:, :hp], gi[:, hp:2 * hp], gi[:, 2 * hp:]
        h_r, h_i, h_n = gh[:, :hp], gh[:, hp:2 * hp], gh[:, 2 * hp:]

        resetgate = jax.nn.sigmoid(i_r + h_r)
        inputgate = jax.nn.sigmoid(i_i + h_i)
        newgate = jnp.tanh(i_n + resetgate * h_n)
        h2 = (1.0 - inputgate) * h2 + inputgate * newgate

    out_ref[...] = h2.reshape(bt, n_nodes, hp).astype(out_ref.dtype)


# ---------------------------------------------------------------------------
# Wrapper
# ---------------------------------------------------------------------------
def _round_up(x, m):
    return (x + m - 1) // m * m


def _pick_b_tile(batch, n_nodes, max_tile=32):
    """Largest-ish divisor of batch (<=max_tile); stops early once rows >= 256."""
    best = 1
    for d in range(1, min(batch, max_tile) + 1):
        if batch % d == 0:
            best = d
            if d * n_nodes >= 256:
                break
    return best


def _prepare_params(p, H, Hp, dtype=jnp.float32):
    """Pad params to lane-dense Hp, split w_ih into its two K=H halves (per-gate
    column blocks of width Hp), and fold b_iah / b_oah into the GRU input bias."""

    def pad2(w, r, c):
        return jnp.zeros((r, c), dtype).at[:w.shape[0], :w.shape[1]].set(w.astype(dtype))

    def pad_gates_mat(w_t):  # (K, 3H) -> (Hp, 3Hp), each gate in its own Hp block
        K = w_t.shape[0]
        out = jnp.zeros((Hp, 3 * Hp), dtype)
        for g in range(3):
            out = out.at[:K, g * Hp:g * Hp + H].set(w_t[:, g * H:(g + 1) * H].astype(dtype))
        return out

    def pad_gates_vec(b):    # (1, 3H) -> (1, 3Hp)
        out = jnp.zeros((1, 3 * Hp), dtype)
        for g in range(3):
            out = out.at[:, g * Hp:g * Hp + H].set(b[:, g * H:(g + 1) * H].astype(dtype))
        return out

    w_ih_in = pad_gates_mat(p["w_ih_t"][:H, :])        # acts on input_in
    w_ih_out = pad_gates_mat(p["w_ih_t"][H:2 * H, :])  # acts on input_out
    w_hh = pad_gates_mat(p["w_hh_t"])

    b_iah = pad2(p["b_iah"], 1, Hp)
    b_oah = pad2(p["b_oah"], 1, Hp)
    # Exact fold: (x + b_iah) @ Wi + (y + b_oah) @ Wo + b_ih
    #           = x @ Wi + y @ Wo + (b_ih + b_iah @ Wi + b_oah @ Wo)
    b_ih = pad_gates_vec(p["b_ih"]) + b_iah @ w_ih_in + b_oah @ w_ih_out

    return {
        "w_in": pad2(p["w_in_t"], Hp, Hp), "b_in": pad2(p["b_in"], 1, Hp),
        "w_out": pad2(p["w_out_t"], Hp, Hp), "b_out": pad2(p["b_out"], 1, Hp),
        "w_ih_in": w_ih_in, "w_ih_out": w_ih_out, "b_ih": b_ih,
        "w_hh": w_hh, "b_hh": pad_gates_vec(p["b_hh"]),
    }


def gnn_forward(A, hidden, params, step=1, matmul_dtype=jnp.float32, b_tile=None):
    """GNN.forward: `step` GNNCell iterations, all inside one pallas_call."""
    B, N, twoN = A.shape
    _, _, H = hidden.shape
    assert twoN == 2 * N

    Hp = _round_up(H, 128)                     # lane-dense feature dim
    if b_tile is None:
        b_tile = _pick_b_tile(B, N)
    assert B % b_tile == 0
    grid = (B // b_tile,)

    pp = _prepare_params(params, H, Hp)

    # Split A outside the kernel -> no in-kernel lane slice of the 2N axis.
    A_in = A[:, :, :N]
    A_out = A[:, :, N:2 * N]
    h_pad = jnp.pad(hidden, ((0, 0), (0, 0), (0, Hp - H))) if Hp != H else hidden

    kernel = functools.partial(_gnn_kernel, step=step, matmul_dtype=matmul_dtype)

    wspec = lambda shape: pl.BlockSpec(shape, lambda i: (0, 0))   # weights: DMA once, stay resident

    grid_spec = pltpu.PrefetchScalarGridSpec(
        num_scalar_prefetch=0,
        grid=grid,
        in_specs=[
            pl.BlockSpec((b_tile, N, N), lambda i: (i, 0, 0)),    # A_in
            pl.BlockSpec((b_tile, N, N), lambda i: (i, 0, 0)),    # A_out
            pl.BlockSpec((b_tile, N, Hp), lambda i: (i, 0, 0)),   # hidden (padded)
            wspec((Hp, Hp)), wspec((1, Hp)),                      # w_in, b_in
            wspec((Hp, Hp)), wspec((1, Hp)),                      # w_out, b_out
            wspec((Hp, 3 * Hp)), wspec((Hp, 3 * Hp)), wspec((1, 3 * Hp)),  # w_ih_in/out, b_ih
            wspec((Hp, 3 * Hp)), wspec((1, 3 * Hp)),              # w_hh, b_hh
        ],
        out_specs=pl.BlockSpec((b_tile, N, Hp), lambda i: (i, 0, 0)),
    )

    out = pl.pallas_call(
        kernel,
        out_shape=jax.ShapeDtypeStruct((B, N, Hp), hidden.dtype),
        grid_spec=grid_spec,
        compiler_params=pltpu.CompilerParams(
            dimension_semantics=("parallel",)),
    )(A_in, A_out, h_pad,
      pp["w_in"], pp["b_in"], pp["w_out"], pp["b_out"],
      pp["w_ih_in"], pp["w_ih_out"], pp["b_ih"],
      pp["w_hh"], pp["b_hh"])

    return out[:, :, :H] if Hp != H else out


# ---------------------------------------------------------------------------
# Parameter init (matches the PyTorch module) + pure-JAX reference
# ---------------------------------------------------------------------------
def init_params(key, hidden_size):
    H = hidden_size
    stdv = 1.0 / (H ** 0.5)
    ks = jax.random.split(key, 12)
    u = lambda k, shape: jax.random.uniform(k, shape, jnp.float32, -stdv, stdv)
    # PyTorch Linear stores weight as (out, in); we store the transpose (in, out).
    return {
        "w_ih_t": u(ks[0], (3 * H, 2 * H)).T,   # (2H, 3H)
        "w_hh_t": u(ks[1], (3 * H, H)).T,       # (H, 3H)
        "b_ih":   u(ks[2], (1, 3 * H)),
        "b_hh":   u(ks[3], (1, 3 * H)),
        "b_iah":  u(ks[4], (1, H)),
        "b_oah":  u(ks[5], (1, H)),
        "w_in_t": u(ks[6], (H, H)).T,           # linear_edge_in
        "b_in":   u(ks[7], (1, H)),
        "w_out_t": u(ks[8], (H, H)).T,          # linear_edge_out
        "b_out":   u(ks[9], (1, H)),
        # linear_edge_f exists in __init__ but is unused in forward.
    }


def gnn_cell_ref(A, hidden, p):
    """Pure-JAX reference of GNNCell for verification."""
    N = A.shape[1]
    edge_in = hidden @ p["w_in_t"] + p["b_in"]
    edge_out = hidden @ p["w_out_t"] + p["b_out"]
    input_in = jnp.einsum("bnm,bmh->bnh", A[:, :, :N], edge_in) + p["b_iah"]
    input_out = jnp.einsum("bnm,bmh->bnh", A[:, :, N:2 * N], edge_out) + p["b_oah"]
    inputs = jnp.concatenate([input_in, input_out], axis=2)
    gi = inputs @ p["w_ih_t"] + p["b_ih"]
    gh = hidden @ p["w_hh_t"] + p["b_hh"]
    H = hidden.shape[-1]
    i_r, i_i, i_n = gi[..., :H], gi[..., H:2 * H], gi[..., 2 * H:]
    h_r, h_i, h_n = gh[..., :H], gh[..., H:2 * H], gh[..., 2 * H:]
    resetgate = jax.nn.sigmoid(i_r + h_r)
    inputgate = jax.nn.sigmoid(i_i + h_i)
    newgate = jnp.tanh(i_n + resetgate * h_n)
    return (1.0 - inputgate) * hidden + inputgate * newgate


if __name__ == "__main__":
    B, N, H = 2, 8, 16   # batch, graph nodes, hidden_size
    STEP = 2             # exercise the in-kernel multi-step path

    key = jax.random.PRNGKey(0)
    k_a, k_h, k_p = jax.random.split(key, 3)

    A = jax.random.uniform(k_a, (B, N, 2 * N), jnp.float32)
    hidden = jax.random.normal(k_h, (B, N, H), jnp.float32)
    params = init_params(k_p, H)

    # f32 matmuls here so the tight reference check holds; pass
    # matmul_dtype=jnp.bfloat16 on v6e/v7x for the MXU-native path.
    out = gnn_forward(A, hidden, params, step=STEP, matmul_dtype=jnp.float32)
    out = jax.block_until_ready(out)

    ref = hidden
    for _ in range(STEP):
        ref = gnn_cell_ref(A, ref, params)

    assert out.shape == (B, N, H)
    assert jnp.allclose(out, ref, atol=1e-4, rtol=1e-4), float(jnp.max(jnp.abs(out - ref)))

    print("KERNEL_OK")
</pallas_src>

<mosaic_0001>
module attributes {stable_mosaic.version = 11 : i64} {
  func.func @_gnn_kernel(%arg0: i32, %arg1: memref<2x8x8xf32, #tpu.memory_space<vmem>>, %arg2: memref<2x8x8xf32, #tpu.memory_space<vmem>>, %arg3: memref<2x8x128xf32, #tpu.memory_space<vmem>>, %arg4: memref<128x128xf32, #tpu.memory_space<vmem>>, %arg5: memref<1x128xf32, #tpu.memory_space<vmem>>, %arg6: memref<128x128xf32, #tpu.memory_space<vmem>>, %arg7: memref<1x128xf32, #tpu.memory_space<vmem>>, %arg8: memref<128x384xf32, #tpu.memory_space<vmem>>, %arg9: memref<128x384xf32, #tpu.memory_space<vmem>>, %arg10: memref<1x384xf32, #tpu.memory_space<vmem>>, %arg11: memref<128x384xf32, #tpu.memory_space<vmem>>, %arg12: memref<1x384xf32, #tpu.memory_space<vmem>>, %arg13: memref<2x8x128xf32, #tpu.memory_space<vmem>>) attributes {dimension_semantics = [#tpu.dimension_semantics<parallel>], iteration_bounds = array<i64: 1>, scalar_prefetch = 0 : i64, scratch_operands = 0 : i64, tpu.core_type = #tpu.core_type<tc>, window_params = [{transform_indices = @transform_0, window_bounds = array<i64: 2, 8, 8>}, {transform_indices = @transform_1, window_bounds = array<i64: 2, 8, 8>}, {transform_indices = @transform_2, window_bounds = array<i64: 2, 8, 128>}, {pipeline_mode = #tpu.pipeline_mode<synchronous>, transform_indices = @transform_3, window_bounds = array<i64: 128, 128>}, {pipeline_mode = #tpu.pipeline_mode<synchronous>, transform_indices = @transform_4, window_bounds = array<i64: 1, 128>}, {pipeline_mode = #tpu.pipeline_mode<synchronous>, transform_indices = @transform_5, window_bounds = array<i64: 128, 128>}, {pipeline_mode = #tpu.pipeline_mode<synchronous>, transform_indices = @transform_6, window_bounds = array<i64: 1, 128>}, {pipeline_mode = #tpu.pipeline_mode<synchronous>, transform_indices = @transform_7, window_bounds = array<i64: 128, 384>}, {pipeline_mode = #tpu.pipeline_mode<synchronous>, transform_indices = @transform_8, window_bounds = array<i64: 128, 384>}, {pipeline_mode = #tpu.pipeline_mode<synchronous>, transform_indices = @transform_9, window_bounds = array<i64: 1, 384>}, {pipeline_mode = #tpu.pipeline_mode<synchronous>, transform_indices = @transform_10, window_bounds = array<i64: 128, 384>}, {pipeline_mode = #tpu.pipeline_mode<synchronous>, transform_indices = @transform_11, window_bounds = array<i64: 1, 384>}, {transform_indices = @transform_12, window_bounds = array<i64: 2, 8, 128>}]} {
    %c0 = arith.constant 0 : index
    %c0_0 = arith.constant 0 : index
    %c0_1 = arith.constant 0 : index
    %0 = vector.load %arg1[%c0, %c0_0, %c0_1] : memref<2x8x8xf32, #tpu.memory_space<vmem>>, vector<2x8x8xf32>
    %c0_2 = arith.constant 0 : index
    %c0_3 = arith.constant 0 : index
    %c0_4 = arith.constant 0 : index
    %1 = vector.load %arg2[%c0_2, %c0_3, %c0_4] : memref<2x8x8xf32, #tpu.memory_space<vmem>>, vector<2x8x8xf32>
    %c0_5 = arith.constant 0 : index
    %c0_6 = arith.constant 0 : index
    %2 = vector.load %arg4[%c0_5, %c0_6] : memref<128x128xf32, #tpu.memory_space<vmem>>, vector<128x128xf32>
    %c0_7 = arith.constant 0 : index
    %c0_8 = arith.constant 0 : index
    %3 = vector.load %arg5[%c0_7, %c0_8] : memref<1x128xf32, #tpu.memory_space<vmem>>, vector<1x128xf32>
    %c0_9 = arith.constant 0 : index
    %c0_10 = arith.constant 0 : index
    %4 = vector.load %arg6[%c0_9, %c0_10] : memref<128x128xf32, #tpu.memory_space<vmem>>, vector<128x128xf32>
    %c0_11 = arith.constant 0 : index
    %c0_12 = arith.constant 0 : index
    %5 = vector.load %arg7[%c0_11, %c0_12] : memref<1x128xf32, #tpu.memory_space<vmem>>, vector<1x128xf32>
    %c0_13 = arith.constant 0 : index
    %c0_14 = arith.constant 0 : index
    %6 = vector.load %arg8[%c0_13, %c0_14] : memref<128x384xf32, #tpu.memory_space<vmem>>, vector<128x384xf32>
    %c0_15 = arith.constant 0 : index
    %c0_16 = arith.constant 0 : index
    %7 = vector.load %arg9[%c0_15, %c0_16] : memref<128x384xf32, #tpu.memory_space<vmem>>, vector<128x384xf32>
    %c0_17 = arith.constant 0 : index
    %c0_18 = arith.constant 0 : index
    %8 = vector.load %arg10[%c0_17, %c0_18] : memref<1x384xf32, #tpu.memory_space<vmem>>, vector<1x384xf32>
    %c0_19 = arith.constant 0 : index
    %c0_20 = arith.constant 0 : index
    %9 = vector.load %arg11[%c0_19, %c0_20] : memref<128x384xf32, #tpu.memory_space<vmem>>, vector<128x384xf32>
    %c0_21 = arith.constant 0 : index
    %c0_22 = arith.constant 0 : index
    %10 = vector.load %arg12[%c0_21, %c0_22] : memref<1x384xf32, #tpu.memory_space<vmem>>, vector<1x384xf32>
    %c0_23 = arith.constant 0 : index
    %c0_24 = arith.constant 0 : index
    %c0_25 = arith.constant 0 : index
    %11 = vector.load %arg3[%c0_23, %c0_24, %c0_25] : memref<2x8x128xf32, #tpu.memory_space<vmem>>, vector<2x8x128xf32>
    %12 = vector.shape_cast %11 : vector<2x8x128xf32> to vector<16x128xf32>
    %cst = arith.constant dense<0.000000e+00> : vector<16x128xf32>
    %13 = tpu.matmul %12, %2, %cst {dimension_numbers = #tpu.dot_dimension_numbers<[1], [0], [0], [1], [0, 0, 1, 1], [], []>} : vector<16x128xf32>, vector<128x128xf32>, vector<16x128xf32> -> vector<16x128xf32>
    %14 = vector.broadcast %3 : vector<1x128xf32> to vector<16x128xf32>
    %15 = arith.addf %13, %14 : vector<16x128xf32>
    %cst_26 = arith.constant dense<0.000000e+00> : vector<16x128xf32>
    %16 = tpu.matmul %12, %4, %cst_26 {dimension_numbers = #tpu.dot_dimension_numbers<[1], [0], [0], [1], [0, 0, 1, 1], [], []>} : vector<16x128xf32>, vector<128x128xf32>, vector<16x128xf32> -> vector<16x128xf32>
    %17 = vector.broadcast %5 : vector<1x128xf32> to vector<16x128xf32>
    %18 = arith.addf %16, %17 : vector<16x128xf32>
    %19 = vector.shape_cast %15 : vector<16x128xf32> to vector<2x8x128xf32>
    "tpu.trace_start"() <{level = 10 : i32, message = "bnm,bmh->bnh"}> : () -> ()
    %cst_27 = arith.constant dense<0.000000e+00> : vector<2x8x128xf32>
    %20 = tpu.matmul %0, %19, %cst_27 {dimension_numbers = #tpu.dot_dimension_numbers<[2], [1], [1], [2], [0, 0, 0, 1, 1, 2], [0], [0]>} : vector<2x8x8xf32>, vector<2x8x128xf32>, vector<2x8x128xf32> -> vector<2x8x128xf32>
    "tpu.trace_stop"() : () -> ()
    %21 = vector.shape_cast %20 : vector<2x8x128xf32> to vector<16x128xf32>
    %22 = vector.shape_cast %18 : vector<16x128xf32> to vector<2x8x128xf32>
    "tpu.trace_start"() <{level = 10 : i32, message = "bnm,bmh->bnh"}> : () -> ()
    %cst_28 = arith.constant dense<0.000000e+00> : vector<2x8x128xf32>
    %23 = tpu.matmul %1, %22, %cst_28 {dimension_numbers = #tpu.dot_dimension_numbers<[2], [1], [1], [2], [0, 0, 0, 1, 1, 2], [0], [0]>} : vector<2x8x8xf32>, vector<2x8x128xf32>, vector<2x8x128xf32> -> vector<2x8x128xf32>
    "tpu.trace_stop"() : () -> ()
    %24 = vector.shape_cast %23 : vector<2x8x128xf32> to vector<16x128xf32>
    %cst_29 = arith.constant dense<0.000000e+00> : vector<16x384xf32>
    %25 = tpu.matmul %21, %6, %cst_29 {dimension_numbers = #tpu.dot_dimension_numbers<[1], [0], [0], [1], [0, 0, 1, 1], [], []>} : vector<16x128xf32>, vector<128x384xf32>, vector<16x384xf32> -> vector<16x384xf32>
    %cst_30 = arith.constant dense<0.000000e+00> : vector<16x384xf32>
    %26 = tpu.matmul %24, %7, %cst_30 {dimension_numbers = #tpu.dot_dimension_numbers<[1], [0], [0], [1], [0, 0, 1, 1], [], []>} : vector<16x128xf32>, vector<128x384xf32>, vector<16x384xf32> -> vector<16x384xf32>
    %27 = arith.addf %25, %26 : vector<16x384xf32>
    %28 = vector.broadcast %8 : vector<1x384xf32> to vector<16x384xf32>
    %29 = arith.addf %27, %28 : vector<16x384xf32>
    %cst_31 = arith.constant dense<0.000000e+00> : vector<16x384xf32>
    %30 = tpu.matmul %12, %9, %cst_31 {dimension_numbers = #tpu.dot_dimension_numbers<[1], [0], [0], [1], [0, 0, 1, 1], [], []>} : vector<16x128xf32>, vector<128x384xf32>, vector<16x384xf32> -> vector<16x384xf32>
    %31 = vector.broadcast %10 : vector<1x384xf32> to vector<16x384xf32>
    %32 = arith.addf %30, %31 : vector<16x384xf32>
    %33 = vector.extract_strided_slice %29 {offsets = [0, 0], sizes = [16, 128], strides = [1, 1]} : vector<16x384xf32> to vector<16x128xf32>
    %34 = vector.extract_strided_slice %29 {offsets = [0, 128], sizes = [16, 128], strides = [1, 1]} : vector<16x384xf32> to vector<16x128xf32>
    %35 = vector.extract_strided_slice %29 {offsets = [0, 256], sizes = [16, 128], strides = [1, 1]} : vector<16x384xf32> to vector<16x128xf32>
    %36 = vector.extract_strided_slice %32 {offsets = [0, 0], sizes = [16, 128], strides = [1, 1]} : vector<16x384xf32> to vector<16x128xf32>
    %37 = vector.extract_strided_slice %32 {offsets = [0, 128], sizes = [16, 128], strides = [1, 1]} : vector<16x384xf32> to vector<16x128xf32>
    %38 = vector.extract_strided_slice %32 {offsets = [0, 256], sizes = [16, 128], strides = [1, 1]} : vector<16x384xf32> to vector<16x128xf32>
    %39 = arith.addf %33, %36 : vector<16x128xf32>
    %40 = arith.negf %39 : vector<16x128xf32>
    %41 = math.exp %40 : vector<16x128xf32>
    %cst_32 = arith.constant 1.000000e+00 : f32
    %42 = vector.broadcast %cst_32 : f32 to vector<16x128xf32>
    %43 = arith.addf %42, %41 : vector<16x128xf32>
    %44 = arith.divf %42, %43 : vector<16x128xf32>
    %45 = arith.addf %34, %37 : vector<16x128xf32>
    %46 = arith.negf %45 : vector<16x128xf32>
    %47 = math.exp %46 : vector<16x128xf32>
    %cst_33 = arith.constant 1.000000e+00 : f32
    %48 = vector.broadcast %cst_33 : f32 to vector<16x128xf32>
    %49 = arith.addf %48, %47 : vector<16x128xf32>
    %50 = arith.divf %48, %49 : vector<16x128xf32>
    %51 = arith.mulf %44, %38 : vector<16x128xf32>
    %52 = arith.addf %35, %51 : vector<16x128xf32>
    %53 = math.tanh %52 : vector<16x128xf32>
    %cst_34 = arith.constant 1.000000e+00 : f32
    %54 = vector.broadcast %cst_34 : f32 to vector<16x128xf32>
    %55 = arith.subf %54, %50 : vector<16x128xf32>
    %56 = arith.mulf %55, %12 : vector<16x128xf32>
    %57 = arith.mulf %50, %53 : vector<16x128xf32>
    %58 = arith.addf %56, %57 : vector<16x128xf32>
    %cst_35 = arith.constant dense<0.000000e+00> : vector<16x128xf32>
    %59 = tpu.matmul %58, %2, %cst_35 {dimension_numbers = #tpu.dot_dimension_numbers<[1], [0], [0], [1], [0, 0, 1, 1], [], []>} : vector<16x128xf32>, vector<128x128xf32>, vector<16x128xf32> -> vector<16x128xf32>
    %60 = vector.broadcast %3 : vector<1x128xf32> to vector<16x128xf32>
    %61 = arith.addf %59, %60 : vector<16x128xf32>
    %cst_36 = arith.constant dense<0.000000e+00> : vector<16x128xf32>
    %62 = tpu.matmul %58, %4, %cst_36 {dimension_numbers = #tpu.dot_dimension_numbers<[1], [0], [0], [1], [0, 0, 1, 1], [], []>} : vector<16x128xf32>, vector<128x128xf32>, vector<16x128xf32> -> vector<16x128xf32>
    %63 = vector.broadcast %5 : vector<1x128xf32> to vector<16x128xf32>
    %64 = arith.addf %62, %63 : vector<16x128xf32>
    %65 = vector.shape_cast %61 : vector<16x128xf32> to vector<2x8x128xf32>
    "tpu.trace_start"() <{level = 10 : i32, message = "bnm,bmh->bnh"}> : () -> ()
    %cst_37 = arith.constant dense<0.000000e+00> : vector<2x8x128xf32>
    %66 = tpu.matmul %0, %65, %cst_37 {dimension_numbers = #tpu.dot_dimension_numbers<[2], [1], [1], [2], [0, 0, 0, 1, 1, 2], [0], [0]>} : vector<2x8x8xf32>, vector<2x8x128xf32>, vector<2x8x128xf32> -> vector<2x8x128xf32>
    "tpu.trace_stop"() : () -> ()
    %67 = vector.shape_cast %66 : vector<2x8x128xf32> to vector<16x128xf32>
    %68 = vector.shape_cast %64 : vector<16x128xf32> to vector<2x8x128xf32>
    "tpu.trace_start"() <{level = 10 : i32, message = "bnm,bmh->bnh"}> : () -> ()
    %cst_38 = arith.constant dense<0.000000e+00> : vector<2x8x128xf32>
    %69 = tpu.matmul %1, %68, %cst_38 {dimension_numbers = #tpu.dot_dimension_numbers<[2], [1], [1], [2], [0, 0, 0, 1, 1, 2], [0], [0]>} : vector<2x8x8xf32>, vector<2x8x128xf32>, vector<2x8x128xf32> -> vector<2x8x128xf32>
    "tpu.trace_stop"() : () -> ()
    %70 = vector.shape_cast %69 : vector<2x8x128xf32> to vector<16x128xf32>
    %cst_39 = arith.constant dense<0.000000e+00> : vector<16x384xf32>
    %71 = tpu.matmul %67, %6, %cst_39 {dimension_numbers = #tpu.dot_dimension_numbers<[1], [0], [0], [1], [0, 0, 1, 1], [], []>} : vector<16x128xf32>, vector<128x384xf32>, vector<16x384xf32> -> vector<16x384xf32>
    %cst_40 = arith.constant dense<0.000000e+00> : vector<16x384xf32>
    %72 = tpu.matmul %70, %7, %cst_40 {dimension_numbers = #tpu.dot_dimension_numbers<[1], [0], [0], [1], [0, 0, 1, 1], [], []>} : vector<16x128xf32>, vector<128x384xf32>, vector<16x384xf32> -> vector<16x384xf32>
    %73 = arith.addf %71, %72 : vector<16x384xf32>
    %74 = vector.broadcast %8 : vector<1x384xf32> to vector<16x384xf32>
    %75 = arith.addf %73, %74 : vector<16x384xf32>
    %cst_41 = arith.constant dense<0.000000e+00> : vector<16x384xf32>
    %76 = tpu.matmul %58, %9, %cst_41 {dimension_numbers = #tpu.dot_dimension_numbers<[1], [0], [0], [1], [0, 0, 1, 1], [], []>} : vector<16x128xf32>, vector<128x384xf32>, vector<16x384xf32> -> vector<16x384xf32>
    %77 = vector.broadcast %10 : vector<1x384xf32> to vector<16x384xf32>
    %78 = arith.addf %76, %77 : vector<16x384xf32>
    %79 = vector.extract_strided_slice %75 {offsets = [0, 0], sizes = [16, 128], strides = [1, 1]} : vector<16x384xf32> to vector<16x128xf32>
    %80 = vector.extract_strided_slice %75 {offsets = [0, 128], sizes = [16, 128], strides = [1, 1]} : vector<16x384xf32> to vector<16x128xf32>
    %81 = vector.extract_strided_slice %75 {offsets = [0, 256], sizes = [16, 128], strides = [1, 1]} : vector<16x384xf32> to vector<16x128xf32>
    %82 = vector.extract_strided_slice %78 {offsets = [0, 0], sizes = [16, 128], strides = [1, 1]} : vector<16x384xf32> to vector<16x128xf32>
    %83 = vector.extract_strided_slice %78 {offsets = [0, 128], sizes = [16, 128], strides = [1, 1]} : vector<16x384xf32> to vector<16x128xf32>
    %84 = vector.extract_strided_slice %78 {offsets = [0, 256], sizes = [16, 128], strides = [1, 1]} : vector<16x384xf32> to vector<16x128xf32>
    %85 = arith.addf %79, %82 : vector<16x128xf32>
    %86 = arith.negf %85 : vector<16x128xf32>
    %87 = math.exp %86 : vector<16x128xf32>
    %cst_42 = arith.constant 1.000000e+00 : f32
    %88 = vector.broadcast %cst_42 : f32 to vector<16x128xf32>
    %89 = arith.addf %88, %87 : vector<16x128xf32>
    %90 = arith.divf %88, %89 : vector<16x128xf32>
    %91 = arith.addf %80, %83 : vector<16x128xf32>
    %92 = arith.negf %91 : vector<16x128xf32>
    %93 = math.exp %92 : vector<16x128xf32>
    %cst_43 = arith.constant 1.000000e+00 : f32
    %94 = vector.broadcast %cst_43 : f32 to vector<16x128xf32>
    %95 = arith.addf %94, %93 : vector<16x128xf32>
    %96 = arith.divf %94, %95 : vector<16x128xf32>
    %97 = arith.mulf %90, %84 : vector<16x128xf32>
    %98 = arith.addf %81, %97 : vector<16x128xf32>
    %99 = math.tanh %98 : vector<16x128xf32>
    %cst_44 = arith.constant 1.000000e+00 : f32
    %100 = vector.broadcast %cst_44 : f32 to vector<16x128xf32>
    %101 = arith.subf %100, %96 : vector<16x128xf32>
    %102 = arith.mulf %101, %58 : vector<16x128xf32>
    %103 = arith.mulf %96, %99 : vector<16x128xf32>
    %104 = arith.addf %102, %103 : vector<16x128xf32>
    %105 = vector.shape_cast %104 : vector<16x128xf32> to vector<2x8x128xf32>
    %c0_45 = arith.constant 0 : index
    %c0_46 = arith.constant 0 : index
    %c0_47 = arith.constant 0 : index
    %106 = vector.load %arg13[%c0_45, %c0_46, %c0_47] : memref<2x8x128xf32, #tpu.memory_space<vmem>>, vector<2x8x128xf32>
    tpu.vector_store %arg13[%c0_45, %c0_46, %c0_47], %105 {strides = array<i32>} : memref<2x8x128xf32, #tpu.memory_space<vmem>>, vector<2x8x128xf32>,
    return
  }
  func.func @transform_0(%arg0: i32) -> (i32, i32, i32) {
    %c0_i32 = arith.constant 0 : i32
    %c0_i32_0 = arith.constant 0 : i32
    %c0_i32_1 = arith.constant 0 : i32
    return %arg0, %c0_i32, %c0_i32_0 : i32, i32, i32
  }
  func.func @transform_1(%arg0: i32) -> (i32, i32, i32) {
    %c0_i32 = arith.constant 0 : i32
    %c0_i32_0 = arith.constant 0 : i32
    %c0_i32_1 = arith.constant 0 : i32
    return %arg0, %c0_i32, %c0_i32_0 : i32, i32, i32
  }
  func.func @transform_2(%arg0: i32) -> (i32, i32, i32) {
    %c0_i32 = arith.constant 0 : i32
    %c0_i32_0 = arith.constant 0 : i32
    %c0_i32_1 = arith.constant 0 : i32
    return %arg0, %c0_i32, %c0_i32_0 : i32, i32, i32
  }
  func.func @transform_3(%arg0: i32) -> (i32, i32) {
    %c0_i32 = arith.constant 0 : i32
    %c0_i32_0 = arith.constant 0 : i32
    %c0_i32_1 = arith.constant 0 : i32
    return %c0_i32, %c0_i32_0 : i32, i32
  }
  func.func @transform_4(%arg0: i32) -> (i32, i32) {
    %c0_i32 = arith.constant 0 : i32
    %c0_i32_0 = arith.constant 0 : i32
    %c0_i32_1 = arith.constant 0 : i32
    return %c0_i32, %c0_i32_0 : i32, i32
  }
  func.func @transform_5(%arg0: i32) -> (i32, i32) {
    %c0_i32 = arith.constant 0 : i32
    %c0_i32_0 = arith.constant 0 : i32
    %c0_i32_1 = arith.constant 0 : i32
    return %c0_i32, %c0_i32_0 : i32, i32
  }
  func.func @transform_6(%arg0: i32) -> (i32, i32) {
    %c0_i32 = arith.constant 0 : i32
    %c0_i32_0 = arith.constant 0 : i32
    %c0_i32_1 = arith.constant 0 : i32
    return %c0_i32, %c0_i32_0 : i32, i32
  }
  func.func @transform_7(%arg0: i32) -> (i32, i32) {
    %c0_i32 = arith.constant 0 : i32
    %c0_i32_0 = arith.constant 0 : i32
    %c0_i32_1 = arith.constant 0 : i32
    return %c0_i32, %c0_i32_0 : i32, i32
  }
  func.func @transform_8(%arg0: i32) -> (i32, i32) {
    %c0_i32 = arith.constant 0 : i32
    %c0_i32_0 = arith.constant 0 : i32
    %c0_i32_1 = arith.constant 0 : i32
    return %c0_i32, %c0_i32_0 : i32, i32
  }
  func.func @transform_9(%arg0: i32) -> (i32, i32) {
    %c0_i32 = arith.constant 0 : i32
    %c0_i32_0 = arith.constant 0 : i32
    %c0_i32_1 = arith.constant 0 : i32
    return %c0_i32, %c0_i32_0 : i32, i32
  }
  func.func @transform_10(%arg0: i32) -> (i32, i32) {
    %c0_i32 = arith.constant 0 : i32
    %c0_i32_0 = arith.constant 0 : i32
    %c0_i32_1 = arith.constant 0 : i32
    return %c0_i32, %c0_i32_0 : i32, i32
  }
  func.func @transform_11(%arg0: i32) -> (i32, i32) {
    %c0_i32 = arith.constant 0 : i32
    %c0_i32_0 = arith.constant 0 : i32
    %c0_i32_1 = arith.constant 0 : i32
    return %c0_i32, %c0_i32_0 : i32, i32
  }
  func.func @transform_12(%arg0: i32) -> (i32, i32, i32) {
    %c0_i32 = arith.constant 0 : i32
    %c0_i32_0 = arith.constant 0 : i32
    %c0_i32_1 = arith.constant 0 : i32
    return %arg0, %c0_i32, %c0_i32_0 : i32, i32, i32
  }
}

</mosaic_0001>

<bundles_post_ra>
// kernel: tpu_custom_call.1
= control target key start
LH: loop header
LB: loop body
LE: loop exit
PB: predicated region body
PF: predicated region fallthrough
CT: control target
= control target key end

     0   :  { %17 = vsyncpa [#allocation3], 0  ;;  %s2582_s0 = inlined_call_operand.hbm [shape: f32[2,8,8], index: 0, kind: input, shape index: {}]   ;;  %s2583_s1 = inlined_call_operand.hbm [shape: f32[2,8,8], index: 1, kind: input, shape index: {}]   ;;  %s2584_s2 = inlined_call_operand.hbm [shape: f32[2,8,128], index: 2, kind: input, shape index: {}]   ;;  %s2585_s3 = inlined_call_operand.hbm [shape: f32[128,128], index: 3, kind: input, shape index: {}]   ;;  %s2586_s4 = inlined_call_operand.hbm [shape: f32[1,128], index: 4, kind: input, shape index: {}]   ;;  %s2587_s5 = inlined_call_operand.hbm [shape: f32[128,128], index: 5, kind: input, shape index: {}]   ;;  %s2588_s6 = inlined_call_operand.hbm [shape: f32[1,128], index: 6, kind: input, shape index: {}]   ;;  %s2589_s7 = inlined_call_operand.hbm [shape: f32[128,384], index: 7, kind: input, shape index: {}]   ;;  %s2590_s8 = inlined_call_operand.hbm [shape: f32[128,384], index: 8, kind: input, shape index: {}]   ;;  %s2591_s9 = inlined_call_operand.vmem [shape: f32[1,384], index: 9, kind: input, shape index: {}]   ;;  %s2592_s10 = inlined_call_operand.hbm [shape: f32[128,384], index: 10, kind: input, shape index: {}]   ;;  %s2593_s11 = inlined_call_operand.vmem [shape: f32[1,384], index: 11, kind: input, shape index: {}]   ;;  %s2594_s12 = inlined_call_operand.hbm [shape: f32[2,8,128], index: 12, kind: output, shape index: {}]  }
   0x1   :  { %18 = vsyncpa [#allocation6], 0 }
   0x2   :  { %19 = vsyncpa [#allocation9], 0 }
   0x3   :  { %20 = vsyncpa [#allocation12], 0 }
   0x4   :  { %21 = vsyncpa [#allocation15], 0 }
   0x5   :  { %22 = vsyncpa [#allocation18], 0 }
   0x6   :  { %23 = vsyncpa [#allocation4], 0  ;;  %s41_s23 = sshll.u32 %s2583_s1, 4  ;;  %s1682_s24 = smov [#allocation5]   ;;  %s42_s23 = int_to_ptr.hbm [resolvable:$true] %s41_s23 }
   0x7   :  { %s43_s25 = sshll.u32 %s1682_s24, 4  ;;  %s67_s28 = sshll.u32 %s2585_s3, 4  ;;  %s44_s25 = int_to_ptr.vmem [resolvable:$true] %s43_s25  ;;  %s68_s28 = int_to_ptr.hbm [resolvable:$true] %s67_s28 }
   0x8   :  { %s1683_s29 = smov 128   ;;  %s1684_s30 = smov 8  }
   0x9   :  { %49 = dma.hbm_to_vmem [thread:$0]  %s42_s23, 256, %s44_s25, [#allocation6], %s1683_s29, %s1683_s29, %s1684_s30  }
   0xa   :  { %s1685_s13 = smov [#allocation8]   ;;  %s91_s1 = sshll.u32 %s2587_s5, 4  ;;  %s92_s1 = int_to_ptr.hbm [resolvable:$true] %s91_s1 }
   0xb   :  { %s69_s14 = sshll.u32 %s1685_s13, 4  ;;  %s115_s18 = sshll.u32 %s2589_s7, 4  ;;  %s70_s14 = int_to_ptr.vmem [resolvable:$true] %s69_s14  ;;  %s116_s18 = int_to_ptr.hbm [resolvable:$true] %s115_s18 }
   0xc   :  { %75 = dma.hbm_to_vmem [thread:$0]  %s68_s28, 2048, %s70_s14, [#allocation9], %s1683_s29, %s1683_s29, %s1684_s30  }
   0xd   :  { %s1686_s19 = smov [#allocation11]   ;;  %s1687_s21 = smov [#allocation14]  }
   0xe   :  { %s93_s20 = sshll.u32 %s1686_s19, 4  ;;  %s117_s5 = sshll.u32 %s1687_s21, 4  ;;  %s94_s20 = int_to_ptr.vmem [resolvable:$true] %s93_s20  ;;  %s118_s5 = int_to_ptr.vmem [resolvable:$true] %s117_s5 }
   0xf   :  { %99 = dma.hbm_to_vmem [thread:$0]  %s92_s1, 2048, %s94_s20, [#allocation12], %s1683_s29, %s1683_s29, %s1684_s30  }
  0x10   :  { %s1688_s22 = smov 384   ;;  %s1689_s23 = smov 24  }
  0x11   :  { %123 = dma.hbm_to_vmem [thread:$0]  %s116_s18, 6144, %s118_s5, [#allocation15], %s1688_s22, %s1688_s22, %s1689_s23  }
  0x12   :  { %s28_s7 = sshll.u32 %s2582_s0, 4  ;;  %s1690_s26 = smov [#allocation2]   ;;  %s29_s7 = int_to_ptr.hbm [resolvable:$true] %s28_s7 }
  0x13   :  { %s30_s27 = sshll.u32 %s1690_s26, 4  ;;  %s54_s14 = sshll.u32 %s2584_s2, 4  ;;  %s31_s27 = int_to_ptr.vmem [resolvable:$true] %s30_s27  ;;  %s55_s14 = int_to_ptr.hbm [resolvable:$true] %s54_s14 }
  0x14   :  { %36 = dma.hbm_to_vmem [thread:$0]  %s29_s7, 256, %s31_s27, [#allocation3], %s1683_s29, %s1683_s29, %s1684_s30  }
  0x15   :  { %s1691_s15 = smov [#allocation7]   ;;  %s81_s17 = sshll.u32 %s2586_s4, 4  ;;  %s82_s17 = int_to_ptr.hbm [resolvable:$true] %s81_s17 }
  0x16   :  { %s56_s16 = sshll.u32 %s1691_s15, 4  ;;  %s105_s2 = sshll.u32 %s2588_s6, 4  ;;  %s57_s16 = int_to_ptr.vmem [resolvable:$true] %s56_s16  ;;  %s106_s2 = int_to_ptr.hbm [resolvable:$true] %s105_s2 }
  0x17   :  { %62 = dma.hbm_to_vmem [thread:$0]  %s55_s14, 256, %s57_s16, [#allocation6], %s1683_s29, %s1683_s29, %s1684_s30  }
  0x18   :  { %s1692_s19 = smov [#allocation10]   ;;  %s1693_s21 = smov [#allocation13]  }
  0x19   :  { %s83_s20 = sshll.u32 %s1692_s19, 4  ;;  %s107_s5 = sshll.u32 %s1693_s21, 4  ;;  %s84_s20 = int_to_ptr.vmem [resolvable:$true] %s83_s20  ;;  %s108_s5 = int_to_ptr.vmem [resolvable:$true] %s107_s5 }
  0x1a   :  { %86 = dma.hbm_to_vmem [thread:$0]  %s82_s17, 16, %s84_s20, [#allocation9]  }
  0x1b   :  { %s128_s4 = sshll.u32 %s2590_s8, 4  ;;  %s143_s27 = sshll.u32 %s2592_s10, 4  ;;  %s129_s4 = int_to_ptr.hbm [resolvable:$true] %s128_s4  ;;  %s144_s27 = int_to_ptr.hbm [resolvable:$true] %s143_s27 }
  0x1c   :  { %110 = dma.hbm_to_vmem [thread:$0]  %s106_s2, 16, %s108_s5, [#allocation12]  }
  0x1d   :  { %s1694_s28 = smov [#allocation16]   ;;  %s1695_s13 = smov [#allocation17]  }
  0x1e   :  { %s130_s6 = sshll.u32 %s1694_s28, 4  ;;  %s145_s14 = sshll.u32 %s1695_s13, 4  ;;  %s131_s6 = int_to_ptr.vmem [resolvable:$true] %s130_s6  ;;  %s146_s14 = int_to_ptr.vmem [resolvable:$true] %s145_s14 }
  0x1f   :  { %136 = dma.hbm_to_vmem [thread:$0]  %s129_s4, 6144, %s131_s6, [#allocation15], %s1688_s22, %s1688_s22, %s1689_s23  }
  0x20   :  { %151 = dma.hbm_to_vmem [thread:$0]  %s144_s27, 6144, %s146_s14, [#allocation18], %s1688_s22, %s1688_s22, %s1689_s23  }
  0x21   :  { %1668 = dma.done.wait [#allocation3], 256  }
  0x22   :  { %1669 = vsyncadd [#allocation3], 4294967040 }
  0x23   :  { %1670 = dma.done.wait [#allocation6], 512  }
  0x24   :  { %1671 = vsyncadd [#allocation6], 4294966784 }
  0x25   :  { %1672 = dma.done.wait [#allocation9], 2064  }
  0x26   :  { %1673 = vsyncadd [#allocation9], 4294965232 }
  0x27   :  { %1674 = dma.done.wait [#allocation12], 2064  }
  0x28   :  { %1675 = vsyncadd [#allocation12], 4294965232 }
  0x29   :  { %1676 = dma.done.wait [#allocation15], 12288  }
  0x2a   :  { %1677 = vsyncadd [#allocation15], 4294955008 }
  0x2b   :  { %1678 = dma.done.wait [#allocation18], 6144  }
  0x2c   :  { %1679 = vsyncadd [#allocation18], 4294961152  ;;  %v1816_v0 = vld [vmem:[#allocation8 + $0x78] sm:$0xff]  ;;  %v1818_v1 = vld [vmem:[#allocation8 + $0x70] sm:$0xff]  ;;  %vm432_vm0 = vcmask 64512   ;;  %s1287_s1 = sshll.u32 %s2594_s12, 4  ;;  %s1288_s1 = int_to_ptr.hbm [resolvable:$true] %s1287_s1 }
  0x2d   :  { %383 = vmatpush.msra.mxu0 %v1816_v0  ;;  %v1821_v2 = vld [vmem:[#allocation11 + $0x78] sm:$0xff]  ;;  %v1823_v3 = vld [vmem:[#allocation8 + $0x68] sm:$0xff]  ;;  %v1826_v4 = vld [vmem:[#allocation11 + $0x70] sm:$0xff] }
  0x2e   :  { %409 = vmatpush.msra.mxu1 %v1821_v2  ;;  %v1829_v5 = vld [vmem:[#allocation11 + $0x68] sm:$0xff]  ;;  %v1831_v6 = vld [vmem:[#allocation8 + $0x60] sm:$0xff]  ;;  %v1837_v8 = vld [vmem:[#allocation8 + $0x58] sm:$0xff] }
  0x2f   :  { %384 = vmatpush.msra.mxu0 %v1818_v1  ;;  %v1835_v7 = vld [vmem:[#allocation11 + $0x60] sm:$0xff]  ;;  %v1841_v9 = vld [vmem:[#allocation11 + $0x58] sm:$0xff]  ;;  %v1843_v10 = vld [vmem:[#allocation8 + $0x50] sm:$0xff] }
  0x30   :  { %410 = vmatpush.msra.mxu1 %v1826_v4  ;;  %v1847_v11 = vld [vmem:[#allocation11 + $0x50] sm:$0xff]  ;;  %v1849_v12 = vld [vmem:[#allocation8 + $0x48] sm:$0xff]  ;;  %v1855_v14 = vld [vmem:[#allocation8 + $0x40] sm:$0xff] }
  0x31   :  { %385 = vmatpush.msra.mxu0 %v1823_v3  ;;  %v1853_v13 = vld [vmem:[#allocation11 + $0x48] sm:$0xff]  ;;  %v1859_v15 = vld [vmem:[#allocation11 + $0x40] sm:$0xff]  ;;  %v1861_v16 = vld [vmem:[#allocation8 + $0x38] sm:$0xff] }
  0x32   :  { %411 = vmatpush.msra.mxu1 %v1829_v5  ;;  %v1865_v17 = vld [vmem:[#allocation11 + $0x38] sm:$0xff]  ;;  %v1867_v18 = vld [vmem:[#allocation8 + $0x30] sm:$0xff]  ;;  %v1873_v20 = vld [vmem:[#allocation8 + $0x28] sm:$0xff] }
  0x33   :  { %386 = vmatpush.msra.mxu0 %v1831_v6  ;;  %v1871_v19 = vld [vmem:[#allocation11 + $0x30] sm:$0xff]  ;;  %v1877_v21 = vld [vmem:[#allocation11 + $0x28] sm:$0xff]  ;;  %v1879_v22 = vld [vmem:[#allocation8 + $0x20] sm:$0xff] }
  0x34   :  { %412 = vmatpush.msra.mxu1 %v1835_v7  ;;  %v1883_v23 = vld [vmem:[#allocation11 + $0x20] sm:$0xff]  ;;  %v1885_v24 = vld [vmem:[#allocation8 + $0x18] sm:$0xff]  ;;  %v1891_v26 = vld [vmem:[#allocation8 + $0x10] sm:$0xff] }
  0x35   :  { %387 = vmatpush.msra.mxu0 %v1837_v8  ;;  %v1889_v25 = vld [vmem:[#allocation11 + $0x18] sm:$0xff]  ;;  %v1895_v27 = vld [vmem:[#allocation11 + $0x10] sm:$0xff]  ;;  %v1897_v28 = vld [vmem:[#allocation8 + $0x8] sm:$0xff] }
  0x36   :  { %413 = vmatpush.msra.mxu1 %v1841_v9  ;;  %v1901_v29 = vld [vmem:[#allocation11 + $0x8] sm:$0xff]  ;;  %v1903_v30 = vld [vmem:[#allocation8] sm:$0xff]  ;;  %v1916_v33 = vld [vmem:[#allocation7 + $0x8] sm:$0xff] }
  0x37   :  { %388 = vmatpush.msra.mxu0 %v1843_v10  ;;  %v1907_v31 = vld [vmem:[#allocation7] sm:$0xff]  ;;  %v1909_v32 = vld [vmem:[#allocation11] sm:$0xff]  ;;  %v1336_v42 = vld [vmem:[#allocation10] ss:$0 sm:$0xff] }
  0x38   :  { %414 = vmatpush.msra.mxu1 %v1847_v11  ;;  %v327_v34 = vld [vmem:[#allocation16 + $0x178] sm:$0xff]  ;;  %v324_v35 = vld [vmem:[#allocation16 + $0x160] sm:$0xff]  ;;  %v321_v36 = vld [vmem:[#allocation16 + $0x148] sm:$0xff] }
  0x39   :  { %389 = vmatpush.msra.mxu0 %v1849_v12  ;;  %v318_v37 = vld [vmem:[#allocation16 + $0x130] sm:$0xff]  ;;  %v1920_v38 = vld [vmem:[#allocation14 + $0x168] sm:$0xff]  ;;  %v315_v40 = vld [vmem:[#allocation16 + $0x118] sm:$0xff] }
  0x3a   :  { %415 = vmatpush.msra.mxu1 %v1853_v13  ;;  %v1923_v39 = vld [vmem:[#allocation14 + $0x150] sm:$0xff]  ;;  %v1926_v41 = vld [vmem:[#allocation14 + $0x138] sm:$0xff]  ;;  %v312_v43 = vld [vmem:[#allocation16 + $0x100] sm:$0xff] }
  0x3b   :  { %390 = vmatpush.msra.mxu0 %v1855_v14  ;;  %2680 = vst [vmem:[#allocation27_spill] sm:$0xff] %v1926_v41  ;;  %v1928_v44 = vld [vmem:[#allocation14 + $0x120] sm:$0xff]  ;;  %v1337_v45 = vld [vmem:[#allocation13] ss:$0 sm:$0xff]  ;;  %v309_v46 = vld [vmem:[#allocation16 + $0xe8] sm:$0xff] }
  0x3c   :  { %416 = vmatpush.msra.mxu1 %v1859_v15  ;;  %2681 = vst [vmem:[#allocation28_spill] sm:$0xff] %v1928_v44  ;;  %v1931_v47 = vld [vmem:[#allocation14 + $0x108] sm:$0xff]  ;;  %v306_v52 = vld [vmem:[#allocation16 + $0xd0] sm:$0xff]  ;;  %v303_v56 = vld [vmem:[#allocation16 + $0xb8] sm:$0xff] }
  0x3d   :  { %391 = vmatpush.msra.mxu0 %v1861_v16  ;;  %2682 = vst [vmem:[#allocation29_spill] sm:$0xff] %v1931_v47  ;;  %v194_v50 = vld [vmem:[#allocation2] sm:$0xff]  ;;  %v1940_v57 = vld [vmem:[#allocation14 + $0xd8] sm:$0xff]  ;;  %v300_v59 = vld [vmem:[#allocation16 + $0xa0] sm:$0xff] }
  0x3e   :  { %417 = vmatpush.msra.mxu1 %v1865_v17  ;;  %v1935_v54 = vld [vmem:[#allocation14 + $0xf0] sm:$0xff]  ;;  %v1937_v55 = vld [vmem:[#allocation16 + $0x168] sm:$0xff]  ;;  %2684 = vst [vmem:[#allocation31_spill] sm:$0xff] %v1940_v57  ;;  %v1946_v60 = vld [vmem:[#allocation14 + $0xc0] sm:$0xff] }
  0x3f   :  { %392 = vmatpush.msra.mxu0 %v1867_v18  ;;  %2683 = vst [vmem:[#allocation30_spill] sm:$0xff] %v1935_v54  ;;  %v1942_v58 = vld [vmem:[#allocation16 + $0x150] sm:$0xff]  ;;  %v1948_v61 = vld [vmem:[#allocation16 + $0x138] sm:$0xff]  ;;  %v297_v62 = vld [vmem:[#allocation16 + $0x88] sm:$0xff] }
  0x40   :  { %418 = vmatpush.msra.mxu1 %v1871_v19  ;;  %2685 = vst [vmem:[#allocation32_spill] sm:$0xff] %v1946_v60 }
  0x41   :  { %393 = vmatpush.msra.mxu0 %v1873_v20 }
  0x42   :  { %419 = vmatpush.msra.mxu1 %v1877_v21 }
  0x43   :  { %394 = vmatpush.msra.mxu0 %v1879_v22 }
  0x44   :  { %420 = vmatpush.msra.mxu1 %v1883_v23 }
  0x45   :  { %395 = vmatpush.msra.mxu0 %v1885_v24 }
  0x46   :  { %421 = vmatpush.msra.mxu1 %v1889_v25 }
  0x47   :  { %396 = vmatpush.msra.mxu0 %v1891_v26 }
  0x48   :  { %422 = vmatpush.msra.mxu1 %v1895_v27 }
  0x49   :  { %397 = vmatpush.msra.mxu0 %v1897_v28 }
  0x4a   :  { %423 = vmatpush.msra.mxu1 %v1901_v29 }
  0x4b   :  { %398 = vmatpush.msra.mxu0 %v1903_v30 }
  0x4c   :  { %399 = vmatmul.f32.vlgmr.msra.gmra.mxu0 %v1907_v31  ;;  %424 = vmatpush.msra.mxu1 %v1909_v32 }
  0x4d   :  { %425 = vmatmul.f32.vlgmr.msra.gmra.mxu1 %v1907_v31  ;;  %571 = vmatpush.msrb.mxu0 %v327_v34  ;;  %v1952_v34 = vld [vmem:[#allocation14 + $0xa8] sm:$0xff] }
  0x4e   :  { %594 = vmatpush.msrb.mxu1 %v1920_v38  ;;  %2686 = vst [vmem:[#allocation33_spill] sm:$0xff] %v1952_v34 }
  0x4f   :  { %572 = vmatpush.msrb.mxu0 %v324_v35 }
  0x50   :  { %595 = vmatpush.msrb.mxu1 %v1923_v39 }
  0x51   :  { %573 = vmatpush.msrb.mxu0 %v321_v36  ;;  %v195_v36 = vld [vmem:[#allocation2 + $0x8] sm:$0xff] }
  0x52   :  { %596 = vmatpush.msrb.mxu1 %v1926_v41  ;;  %v2092_v41 = vld [vmem:[#allocation14 + $0xe0] sm:$0xff] }
  0x53   :  { %574 = vmatpush.msrb.mxu0 %v318_v37  ;;  %v196_v37 = vld [vmem:[#allocation5] sm:$0xff]  ;;  %2717 = vst [vmem:[#allocation64_spill] sm:$0xff] %v2092_v41 }
  0x54   :  { %402 = vmatmul.f32.gmra.mxu0 %v1916_v33  ;;  %597 = vmatpush.msrb.mxu1 %v1928_v44  ;;  %v2086_v44 = vld [vmem:[#allocation14 + $0xf8] sm:$0xff] }
  0x55   :  { %428 = vmatmul.f32.gmra.mxu1 %v1916_v33  ;;  %575 = vmatpush.msrb.mxu0 %v315_v40  ;;  %2715 = vst [vmem:[#allocation62_spill] sm:$0xff] %v2086_v44 }
  0x56   :  { %598 = vmatpush.msrb.mxu1 %v1931_v47  ;;  %v2080_v47 = vld [vmem:[#allocation14 + $0x110] sm:$0xff] }
  0x57   :  { %576 = vmatpush.msrb.mxu0 %v312_v43  ;;  %2713 = vst [vmem:[#allocation60_spill] sm:$0xff] %v2080_v47 }
  0x58   :  { %599 = vmatpush.msrb.mxu1 %v1935_v54  ;;  %v2078_v54 = vld [vmem:[#allocation14 + $0x178] sm:$0xff] }
  0x59   :  { %577 = vmatpush.msrb.mxu0 %v309_v46  ;;  %v1956_v46 = vld [vmem:[#allocation16 + $0x120] sm:$0xff]  ;;  %2712 = vst [vmem:[#allocation59_spill] sm:$0xff] %v2078_v54 }
  0x5a   :  { %600 = vmatpush.msrb.mxu1 %v1940_v57  ;;  %v2072_v57 = vld [vmem:[#allocation14 + $0x128] sm:$0xff] }
  0x5b   :  { %578 = vmatpush.msrb.mxu0 %v306_v52  ;;  %v1968_v52 = vld [vmem:[#allocation16 + $0xf0] sm:$0xff]  ;;  %2710 = vst [vmem:[#allocation57_spill] sm:$0xff] %v2072_v57 }
  0x5c   :  { %601 = vmatpush.msrb.mxu1 %v1946_v60  ;;  %v2066_v60 = vld [vmem:[#allocation14 + $0x140] sm:$0xff] }
  0x5d   :  { %579 = vmatpush.msrb.mxu0 %v303_v56  ;;  %v1973_v56 = vld [vmem:[#allocation16 + $0x140] sm:$0xff]  ;;  %2708 = vst [vmem:[#allocation55_spill] sm:$0xff] %v2066_v60 }
  0x5e   :  { %602 = vmatpush.msrb.mxu1 %v1952_v34  ;;  %2690 = vst [vmem:[#allocation37_spill] sm:$0xff] %v1973_v56  ;;  %v2060_v34 = vld [vmem:[#allocation14 + $0x158] sm:$0xff] }
  0x5f   :  { %580 = vmatpush.msrb.mxu0 %v300_v59  ;;  %v288_v59 = vld [vmem:[#allocation16 + $0x40] sm:$0xff] }
  0x61   :  { %581 = vmatpush.msrb.mxu0 %v297_v62  ;;  %v1977_v62 = vld [vmem:[#allocation16 + $0xd8] sm:$0xff] }
  0xc9   :  { %v400_v48 = vpop.f32.mrf.mxu0 }
  0xca   :  { %v401_v49 = vadd.f32 %v1336_v42, %v400_v48  ;;  %v426_v51 = vpop.f32.mrf.mxu1  ;;  %v326_v48 = vld [vmem:[#allocation16 + $0x170] sm:$0xff] }
  0xcb   :  { %v427_v53 = vadd.f32 %v1337_v45, %v426_v51  ;;  %v291_v51 = vld [vmem:[#allocation16 + $0x58] sm:$0xff] }
  0xcc   :  { %451 = vmatpush.msra.mxu2 %v401_v49  ;;  %v294_v49 = vld [vmem:[#allocation16 + $0x70] sm:$0xff] }
  0xcd   :  { %1305 = vmatmul.msk.f32.vlgmr.msra.gmra.mxu2 %vm432_vm0, %v194_v50  ;;  %v1963_v50 = vld [vmem:[#allocation14 + $0x90] sm:$0xff]  ;;  %582 = vmatpush.msrb.mxu0 %v294_v49 }
  0xce   :  { %497 = vmatpush.msrb.mxu2 %v427_v53  ;;  %2687 = vst [vmem:[#allocation34_spill] sm:$0xff] %v1963_v50  ;;  %v1970_v53 = vld [vmem:[#allocation14 + $0x78] sm:$0xff]  ;;  %603 = vmatpush.msrb.mxu1 %v1963_v50  ;;  %v1996_v49 = vld [vmem:[#allocation16 + $0x110] sm:$0xff] }
  0xcf   :  { %2689 = vst [vmem:[#allocation36_spill] sm:$0xff] %v1970_v53  ;;  %583 = vmatpush.msrb.mxu0 %v291_v51  ;;  %v1998_v51 = vld [vmem:[#allocation16 + $0xa8] sm:$0xff]  ;;  %v2038_v50 = vld [vmem:[#allocation16 + $0x30] sm:$0xff] }
  0xd0   :  { %525 = vmatpush.msra.mxu2 %v1937_v55  ;;  %604 = vmatpush.msrb.mxu1 %v1970_v53  ;;  %2695 = vst [vmem:[#allocation42_spill] sm:$0xff] %v1996_v49  ;;  %v2015_v53 = vld [vmem:[#allocation16 + $0x78] sm:$0xff] }
  0xd1   :  { %v403_v63 = vpop.f32.mrf.mxu0  ;;  %584 = vmatpush.msrb.mxu0 %v288_v59  ;;  %v374_v59 = vld [vmem:[#allocation17 + $0x168] sm:$0xff] }
  0xd2   :  { %526 = vmatpush.msra.mxu2 %v1942_v58  ;;  %v404_v35 = vadd.f32 %v1336_v42, %v403_v63  ;;  %v429_v40 = vpop.f32.mrf.mxu1  ;;  %v1961_v42 = vld [vmem:[#allocation16 + $0x108] sm:$0xff]  ;;  %v1979_v63 = vld [vmem:[#allocation14 + $0x60] sm:$0xff] }
  0xd3   :  { %v430_v43 = vadd.f32 %v1337_v45, %v429_v40  ;;  %v1966_v45 = vld [vmem:[#allocation16 + $0x158] sm:$0xff]  ;;  %2691 = vst [vmem:[#allocation38_spill] sm:$0xff] %v1979_v63  ;;  %v1988_v40 = vld [vmem:[#allocation16 + $0xc0] sm:$0xff]  ;;  %605 = vmatpush.msrb.mxu1 %v1979_v63  ;;  %v2006_v63 = vld [vmem:[#allocation16 + $0x90] sm:$0xff] }
  0xd4   :  { %527 = vmatpush.msra.mxu2 %v1948_v61  ;;  %474 = vmatpush.msra.mxu3 %v404_v35  ;;  %2688 = vst [vmem:[#allocation35_spill] sm:$0xff] %v1966_v45  ;;  %v1981_v35 = vld [vmem:[#allocation5 + $0x8] sm:$0xff] }
  0xd5   :  { %1306 = vmatmul.msk.f32.vlgmr.msra.gmra.mxu3 %vm432_vm0, %v195_v36  ;;  %1307 = vmatmul.msk.f32.vlgmr.msrb.gmra.mxu2 %vm432_vm0, %v196_v37  ;;  %2692 = vst [vmem:[#allocation39_spill] sm:$0xff] %v1981_v35  ;;  %v285_v36 = vld [vmem:[#allocation16 + $0x28] sm:$0xff] }
  0xd6   :  { %520 = vmatpush.msrb.mxu3 %v430_v43  ;;  %528 = vmatpush.msra.mxu2 %v1956_v46  ;;  %v1986_v37 = vld [vmem:[#allocation16 + $0x128] sm:$0xff]  ;;  %v282_v43 = vld [vmem:[#allocation16 + $0x10] sm:$0xff] }
  0xd7   :  { %2693 = vst [vmem:[#allocation40_spill] sm:$0xff] %v1986_v37  ;;  %585 = vmatpush.msrb.mxu0 %v285_v36  ;;  %v2011_v36 = vld [vmem:[#allocation14 + $0x18] sm:$0xff] }
  0xd8   :  { %548 = vmatpush.msra.mxu3 %v326_v48  ;;  %529 = vmatpush.msra.mxu2 %v1961_v42  ;;  %v1992_v48 = vld [vmem:[#allocation14 + $0x48] sm:$0xff]  ;;  %2698 = vst [vmem:[#allocation45_spill] sm:$0xff] %v2011_v36 }
  0xd9   :  { %2694 = vst [vmem:[#allocation41_spill] sm:$0xff] %v1992_v48  ;;  %586 = vmatpush.msrb.mxu0 %v282_v43  ;;  %606 = vmatpush.msrb.mxu1 %v1992_v48  ;;  %v2020_v43 = vld [vmem:[#allocation17 + $0x138] sm:$0xff]  ;;  %v2022_v48 = vld [vmem:[#allocation16 + $0xc8] sm:$0xff] }
  0xda   :  { %549 = vmatpush.msra.mxu3 %v1966_v45  ;;  %530 = vmatpush.msra.mxu2 %v1968_v52  ;;  %v2004_v45 = vld [vmem:[#allocation16 + $0xf8] sm:$0xff]  ;;  %2700 = vst [vmem:[#allocation47_spill] sm:$0xff] %v2020_v43 }
  0xdb   :  { %2697 = vst [vmem:[#allocation44_spill] sm:$0xff] %v2004_v45  ;;  %683 = vmatpush.msra.mxu0 %v374_v59  ;;  %v2029_v59 = vld [vmem:[#allocation16 + $0xb0] sm:$0xff] }
  0xdc   :  { %550 = vmatpush.msra.mxu3 %v1973_v56  ;;  %531 = vmatpush.msra.mxu2 %v1977_v62  ;;  %v2002_v56 = vld [vmem:[#allocation14 + $0x30] sm:$0xff]  ;;  %2701 = vst [vmem:[#allocation48_spill] sm:$0xff] %v2022_v48 }
  0xdd   :  { %1308 = vmatmul.msk.f32.vlgmr.msrb.gmra.mxu3 %vm432_vm0, %v1981_v35  ;;  %2696 = vst [vmem:[#allocation43_spill] sm:$0xff] %v2002_v56  ;;  %v371_v35 = vld [vmem:[#allocation17 + $0x150] sm:$0xff]  ;;  %607 = vmatpush.msrb.mxu1 %v2002_v56  ;;  %v2031_v56 = vld [vmem:[#allocation16 + $0x48] sm:$0xff] }
  0xde   :  { %551 = vmatpush.msra.mxu3 %v1986_v37  ;;  %532 = vmatpush.msra.mxu2 %v1988_v40  ;;  %v2013_v37 = vld [vmem:[#allocation16 + $0xe0] sm:$0xff]  ;;  %2702 = vst [vmem:[#allocation49_spill] sm:$0xff] %v2029_v59 }
  0xdf   :  { %2699 = vst [vmem:[#allocation46_spill] sm:$0xff] %v2013_v37  ;;  %684 = vmatpush.msra.mxu0 %v371_v35  ;;  %608 = vmatpush.msrb.mxu1 %v2011_v36  ;;  %v2042_v35 = vld [vmem:[#allocation16 + $0x80] sm:$0xff]  ;;  %v2054_v36 = vld [vmem:[#allocation14 + $0x170] sm:$0xff] }
  0xe0   :  { %552 = vmatpush.msra.mxu3 %v1996_v49  ;;  %533 = vmatpush.msra.mxu2 %v1998_v51  ;;  %v2024_v49 = vld [vmem:[#allocation16 + $0x60] sm:$0xff]  ;;  %2704 = vst [vmem:[#allocation51_spill] sm:$0xff] %v2042_v35 }
  0xe1   :  { %685 = vmatpush.msra.mxu0 %v2020_v43  ;;  %v2048_v43 = vld [vmem:[#allocation16 + $0x68] sm:$0xff] }
  0xe2   :  { %553 = vmatpush.msra.mxu3 %v2004_v45  ;;  %534 = vmatpush.msra.mxu2 %v2006_v63  ;;  %v2036_v45 = vld [vmem:[#allocation16 + $0x98] sm:$0xff]  ;;  %2705 = vst [vmem:[#allocation52_spill] sm:$0xff] %v2048_v43 }
  0xe3   :  { %2703 = vst [vmem:[#allocation50_spill] sm:$0xff] %v2036_v45 }
  0xe4   :  { %554 = vmatpush.msra.mxu3 %v2013_v37  ;;  %535 = vmatpush.msra.mxu2 %v2015_v53  ;;  %v2044_v37 = vld [vmem:[#allocation16 + $0x18] sm:$0xff] }
  0xe6   :  { %555 = vmatpush.msra.mxu3 %v2022_v48  ;;  %536 = vmatpush.msra.mxu2 %v2024_v49  ;;  %v2050_v48 = vld [vmem:[#allocation16] sm:$0xff] }
  0xe8   :  { %556 = vmatpush.msra.mxu3 %v2029_v59  ;;  %537 = vmatpush.msra.mxu2 %v2031_v56  ;;  %v2056_v59 = vld [vmem:[#allocation16 + $0x50] sm:$0xff] }
  0xe9   :  { %2706 = vst [vmem:[#allocation53_spill] sm:$0xff] %v2056_v59 }
  0xea   :  { %557 = vmatpush.msra.mxu3 %v2036_v45  ;;  %538 = vmatpush.msra.mxu2 %v2038_v50  ;;  %v2063_v45 = vld [vmem:[#allocation16 + $0x38] sm:$0xff] }
  0xeb   :  { %2707 = vst [vmem:[#allocation54_spill] sm:$0xff] %v2063_v45 }
  0xec   :  { %558 = vmatpush.msra.mxu3 %v2042_v35  ;;  %539 = vmatpush.msra.mxu2 %v2044_v37  ;;  %v2069_v35 = vld [vmem:[#allocation16 + $0x20] sm:$0xff] }
  0xed   :  { %2709 = vst [vmem:[#allocation56_spill] sm:$0xff] %v2069_v35 }
  0xee   :  { %559 = vmatpush.msra.mxu3 %v2048_v43  ;;  %540 = vmatpush.msra.mxu2 %v2050_v48  ;;  %v2075_v43 = vld [vmem:[#allocation16 + $0x8] sm:$0xff] }
  0xef   :  { %2711 = vst [vmem:[#allocation58_spill] sm:$0xff] %v2075_v43 }
  0xf0   :  { %617 = vmatpush.msrb.mxu2 %v2054_v36  ;;  %560 = vmatpush.msra.mxu3 %v2056_v59  ;;  %v2084_v59 = vld [vmem:[#allocation14 + $0x160] sm:$0xff] }
  0xf1   :  { %2714 = vst [vmem:[#allocation61_spill] sm:$0xff] %v2084_v59 }
  0xf2   :  { %618 = vmatpush.msrb.mxu2 %v2060_v34  ;;  %561 = vmatpush.msra.mxu3 %v2063_v45  ;;  %v2090_v45 = vld [vmem:[#allocation14 + $0x148] sm:$0xff] }
  0xf3   :  { %2716 = vst [vmem:[#allocation63_spill] sm:$0xff] %v2090_v45 }
  0xf4   :  { %619 = vmatpush.msrb.mxu2 %v2066_v60  ;;  %562 = vmatpush.msra.mxu3 %v2069_v35  ;;  %v2100_v35 = vld [vmem:[#allocation14 + $0x130] sm:$0xff]  ;;  %v2138_v60 = vld [vmem:[#allocation14 + $0x80] sm:$0xff] }
  0xf5   :  { %2719 = vst [vmem:[#allocation66_spill] sm:$0xff] %v2100_v35 }
  0xf6   :  { %620 = vmatpush.msrb.mxu2 %v2072_v57  ;;  %563 = vmatpush.msra.mxu3 %v2075_v43  ;;  %v2098_v43 = vld [vmem:[#allocation14] sm:$0xff]  ;;  %2733 = vst [vmem:[#allocation80_spill] sm:$0xff] %v2138_v60 }
  0xf7   :  { %2718 = vst [vmem:[#allocation65_spill] sm:$0xff] %v2098_v43  ;;  %v2102_v57 = vld [vmem:[#allocation17 + $0x120] sm:$0xff]  ;;  %609 = vmatpush.msrb.mxu1 %v2098_v43 }
  0xf8   :  { %640 = vmatpush.msrb.mxu3 %v2078_v54  ;;  %621 = vmatpush.msrb.mxu2 %v2080_v47  ;;  %2720 = vst [vmem:[#allocation67_spill] sm:$0xff] %v2102_v57  ;;  %v2106_v54 = vld [vmem:[#allocation14 + $0xc8] sm:$0xff]  ;;  %v2120_v43 = vld [vmem:[#allocation14 + $0x100] sm:$0xff] }
  0xf9   :  { %2721 = vst [vmem:[#allocation68_spill] sm:$0xff] %v2106_v54  ;;  %686 = vmatpush.msra.mxu0 %v2102_v57  ;;  %v2126_v57 = vld [vmem:[#allocation17 + $0x158] sm:$0xff]  ;;  %v2130_v47 = vld [vmem:[#allocation14 + $0xe8] sm:$0xff] }
  0xfa   :  { %641 = vmatpush.msrb.mxu3 %v2084_v59  ;;  %622 = vmatpush.msrb.mxu2 %v2086_v44  ;;  %v2110_v59 = vld [vmem:[#allocation14 + $0x118] sm:$0xff]  ;;  %v2118_v44 = vld [vmem:[#allocation14 + $0xb0] sm:$0xff]  ;;  %2726 = vst [vmem:[#allocation73_spill] sm:$0xff] %v2120_v43 }
  0xfb   :  { %2722 = vst [vmem:[#allocation69_spill] sm:$0xff] %v2110_v59 }
  0xfc   :  { %642 = vmatpush.msrb.mxu3 %v2090_v45  ;;  %623 = vmatpush.msrb.mxu2 %v2092_v41  ;;  %v2112_v45 = vld [vmem:[#allocation17 + $0x108] sm:$0xff]  ;;  %v2114_v41 = vld [vmem:[#allocation17 + $0x170] sm:$0xff]  ;;  %2725 = vst [vmem:[#allocation72_spill] sm:$0xff] %v2118_v44 }
  0xfd   :  { %2723 = vst [vmem:[#allocation70_spill] sm:$0xff] %v2112_v45  ;;  %706 = vmatpush.msra.mxu1 %v2114_v41  ;;  %687 = vmatpush.msra.mxu0 %v2112_v45  ;;  %v2146_v45 = vld [vmem:[#allocation14 + $0xd0] sm:$0xff] }
  0xfe   :  { %643 = vmatpush.msrb.mxu3 %v2100_v35  ;;  %624 = vmatpush.msrb.mxu2 %v2106_v54  ;;  %2724 = vst [vmem:[#allocation71_spill] sm:$0xff] %v2114_v41  ;;  %v2122_v35 = vld [vmem:[#allocation17 + $0xf0] sm:$0xff]  ;;  %v2128_v54 = vld [vmem:[#allocation14 + $0x98] sm:$0xff]  ;;  %v2136_v41 = vld [vmem:[#allocation17 + $0x140] sm:$0xff] }
  0xff   :  { %2727 = vst [vmem:[#allocation74_spill] sm:$0xff] %v2122_v35  ;;  %707 = vmatpush.msra.mxu1 %v2126_v57  ;;  %688 = vmatpush.msra.mxu0 %v2122_v35  ;;  %v2155_v35 = vld [vmem:[#allocation14 + $0x68] sm:$0xff] }
 0x100   :  { %644 = vmatpush.msrb.mxu3 %v2110_v59  ;;  %625 = vmatpush.msrb.mxu2 %v2118_v44  ;;  %2728 = vst [vmem:[#allocation75_spill] sm:$0xff] %v2126_v57  ;;  %v2134_v59 = vld [vmem:[#allocation17 + $0xd8] sm:$0xff]  ;;  %v2150_v57 = vld [vmem:[#allocation17 + $0x128] sm:$0xff]  ;;  %v2186_v44 = vld [vmem:[#allocation14 + $0x20] sm:$0xff] }
 0x101   :  { %2729 = vst [vmem:[#allocation76_spill] sm:$0xff] %v2128_v54  ;;  %708 = vmatpush.msra.mxu1 %v2136_v41  ;;  %689 = vmatpush.msra.mxu0 %v2134_v59 }
 0x102   :  { %2730 = vst [vmem:[#allocation77_spill] sm:$0xff] %v2130_v47  ;;  %645 = vmatpush.msrb.mxu3 %v2120_v43  ;;  %626 = vmatpush.msrb.mxu2 %v2128_v54  ;;  %v2148_v43 = vld [vmem:[#allocation17 + $0xc0] sm:$0xff]  ;;  %v2178_v54 = vld [vmem:[#allocation14 + $0x88] sm:$0xff] }
 0x103   :  { %2731 = vst [vmem:[#allocation78_spill] sm:$0xff] %v2134_v59  ;;  %709 = vmatpush.msra.mxu1 %v2150_v57  ;;  %690 = vmatpush.msra.mxu0 %v2148_v43  ;;  %v2160_v59 = vld [vmem:[#allocation17 + $0xa8] sm:$0xff] }
 0x104   :  { %2732 = vst [vmem:[#allocation79_spill] sm:$0xff] %v2136_v41  ;;  %646 = vmatpush.msrb.mxu3 %v2130_v47  ;;  %627 = vmatpush.msrb.mxu2 %v2138_v60  ;;  %v2158_v47 = vld [vmem:[#allocation14 + $0xb8] sm:$0xff]  ;;  %v2162_v41 = vld [vmem:[#allocation17 + $0x110] sm:$0xff] }
 0x105   :  { %2734 = vst [vmem:[#allocation81_spill] sm:$0xff] %v2146_v45  ;;  %691 = vmatpush.msra.mxu0 %v2160_v59  ;;  %v2166_v60 = vld [vmem:[#allocation14 + $0x50] sm:$0xff]  ;;  %710 = vmatpush.msra.mxu1 %v2162_v41 }
 0x106   :  { %2735 = vst [vmem:[#allocation82_spill] sm:$0xff] %v2148_v43  ;;  %647 = vmatpush.msrb.mxu3 %v2146_v45  ;;  %628 = vmatpush.msrb.mxu2 %v2155_v35  ;;  %v2168_v45 = vld [vmem:[#allocation14 + $0xa0] sm:$0xff]  ;;  %v2174_v43 = vld [vmem:[#allocation17 + $0xf8] sm:$0xff] }
 0x107   :  { %2736 = vst [vmem:[#allocation83_spill] sm:$0xff] %v2150_v57  ;;  %v2170_v57 = vld [vmem:[#allocation17 + $0x90] sm:$0xff]  ;;  %711 = vmatpush.msra.mxu1 %v2174_v43 }
 0x108   :  { %2737 = vst [vmem:[#allocation84_spill] sm:$0xff] %v2155_v35  ;;  %648 = vmatpush.msrb.mxu3 %v2158_v47  ;;  %629 = vmatpush.msrb.mxu2 %v2166_v60  ;;  %v2176_v35 = vld [vmem:[#allocation14 + $0x38] sm:$0xff] }
 0x109   :  { %2738 = vst [vmem:[#allocation85_spill] sm:$0xff] %v2158_v47  ;;  %692 = vmatpush.msra.mxu0 %v2170_v57  ;;  %v2184_v47 = vld [vmem:[#allocation17 + $0xe0] sm:$0xff] }
 0x10a   :  { %2739 = vst [vmem:[#allocation86_spill] sm:$0xff] %v2160_v59  ;;  %649 = vmatpush.msrb.mxu3 %v2168_v45  ;;  %v2182_v59 = vld [vmem:[#allocation17 + $0x78] sm:$0xff]  ;;  %630 = vmatpush.msrb.mxu2 %v2176_v35 }
 0x10b   :  { %2740 = vst [vmem:[#allocation87_spill] sm:$0xff] %v2162_v41  ;;  %693 = vmatpush.msra.mxu0 %v2182_v59  ;;  %712 = vmatpush.msra.mxu1 %v2184_v47  ;;  %v2198_v41 = vld [vmem:[#allocation17 + $0xc8] sm:$0xff] }
 0x10c   :  { %2741 = vst [vmem:[#allocation88_spill] sm:$0xff] %v2168_v45  ;;  %650 = vmatpush.msrb.mxu3 %v2178_v54  ;;  %631 = vmatpush.msrb.mxu2 %v2186_v44  ;;  %v2194_v45 = vld [vmem:[#allocation14 + $0x70] sm:$0xff] }
 0x10d   :  { %2742 = vst [vmem:[#allocation89_spill] sm:$0xff] %v2170_v57  ;;  %v2196_v57 = vld [vmem:[#allocation17 + $0x60] sm:$0xff]  ;;  %713 = vmatpush.msra.mxu1 %v2198_v41 }
 0x10e   :  { %2743 = vst [vmem:[#allocation90_spill] sm:$0xff] %v2174_v43  ;;  %651 = vmatpush.msrb.mxu3 %v2194_v45  ;;  %694 = vmatpush.msra.mxu0 %v2196_v57  ;;  %v2202_v43 = vld [vmem:[#allocation14 + $0x8] sm:$0xff] }
 0x10f   :  { %2744 = vst [vmem:[#allocation91_spill] sm:$0xff] %v2176_v35  ;;  %632 = vmatpush.msrb.mxu2 %v2202_v43  ;;  %v2227_v35 = vld [vmem:[#allocation17 + $0x80] sm:$0xff] }
 0x110   :  { %2745 = vst [vmem:[#allocation92_spill] sm:$0xff] %v2178_v54  ;;  %v2208_v54 = vld [vmem:[#allocation17 + $0x48] sm:$0xff] }
 0x111   :  { %2746 = vst [vmem:[#allocation93_spill] sm:$0xff] %v2182_v59  ;;  %v2206_v59 = vld [vmem:[#allocation14 + $0x58] sm:$0xff]  ;;  %695 = vmatpush.msra.mxu0 %v2208_v54 }
 0x112   :  { %2747 = vst [vmem:[#allocation94_spill] sm:$0xff] %v2184_v47  ;;  %v2210_v47 = vld [vmem:[#allocation17 + $0xb0] sm:$0xff]  ;;  %652 = vmatpush.msrb.mxu3 %v2206_v59 }
 0x113   :  { %2748 = vst [vmem:[#allocation95_spill] sm:$0xff] %v2186_v44  ;;  %v2214_v44 = vld [vmem:[#allocation14 + $0x40] sm:$0xff]  ;;  %714 = vmatpush.msra.mxu1 %v2210_v47 }
 0x114   :  { %2749 = vst [vmem:[#allocation96_spill] sm:$0xff] %v2194_v45  ;;  %v2216_v45 = vld [vmem:[#allocation17 + $0x30] sm:$0xff]  ;;  %653 = vmatpush.msrb.mxu3 %v2214_v44 }
 0x115   :  { %2750 = vst [vmem:[#allocation97_spill] sm:$0xff] %v2196_v57  ;;  %v2219_v57 = vld [vmem:[#allocation17 + $0x98] sm:$0xff]  ;;  %696 = vmatpush.msra.mxu0 %v2216_v45 }
 0x116   :  { %2751 = vst [vmem:[#allocation98_spill] sm:$0xff] %v2198_v41  ;;  %v2221_v41 = vld [vmem:[#allocation14 + $0x28] sm:$0xff]  ;;  %715 = vmatpush.msra.mxu1 %v2219_v57 }
 0x117   :  { %2752 = vst [vmem:[#allocation99_spill] sm:$0xff] %v2202_v43  ;;  %v2225_v43 = vld [vmem:[#allocation17 + $0x18] sm:$0xff]  ;;  %654 = vmatpush.msrb.mxu3 %v2221_v41 }
 0x118   :  { %2753 = vst [vmem:[#allocation100_spill] sm:$0xff] %v2206_v59  ;;  %v2232_v59 = vld [vmem:[#allocation17] sm:$0xff]  ;;  %697 = vmatpush.msra.mxu0 %v2225_v43  ;;  %716 = vmatpush.msra.mxu1 %v2227_v35 }
 0x119   :  { %2754 = vst [vmem:[#allocation101_spill] sm:$0xff] %v2208_v54  ;;  %v2230_v54 = vld [vmem:[#allocation14 + $0x10] sm:$0xff] }
 0x11a   :  { %2755 = vst [vmem:[#allocation102_spill] sm:$0xff] %v2210_v47  ;;  %v2236_v47 = vld [vmem:[#allocation17 + $0x68] sm:$0xff]  ;;  %655 = vmatpush.msrb.mxu3 %v2230_v54  ;;  %698 = vmatpush.msra.mxu0 %v2232_v59 }
 0x11b   :  { %2756 = vst [vmem:[#allocation103_spill] sm:$0xff] %v2214_v44  ;;  %717 = vmatpush.msra.mxu1 %v2236_v47  ;;  %v2244_v44 = vld [vmem:[#allocation17 + $0x38] sm:$0xff] }
 0x11c   :  { %2757 = vst [vmem:[#allocation104_spill] sm:$0xff] %v2216_v45  ;;  %v2242_v45 = vld [vmem:[#allocation17 + $0x50] sm:$0xff] }
 0x11d   :  { %2758 = vst [vmem:[#allocation105_spill] sm:$0xff] %v2219_v57  ;;  %718 = vmatpush.msra.mxu1 %v2242_v45  ;;  %v2247_v57 = vld [vmem:[#allocation17 + $0x20] sm:$0xff] }
 0x11e   :  { %2759 = vst [vmem:[#allocation106_spill] sm:$0xff] %v2221_v41 }
 0x11f   :  { %2760 = vst [vmem:[#allocation107_spill] sm:$0xff] %v2225_v43  ;;  %719 = vmatpush.msra.mxu1 %v2244_v44  ;;  %v2250_v43 = vld [vmem:[#allocation17 + $0x8] sm:$0xff] }
 0x120   :  { %2761 = vst [vmem:[#allocation108_spill] sm:$0xff] %v2230_v54 }
 0x121   :  { %2762 = vst [vmem:[#allocation109_spill] sm:$0xff] %v2232_v59  ;;  %720 = vmatpush.msra.mxu1 %v2247_v57 }
 0x122   :  { %2763 = vst [vmem:[#allocation110_spill] sm:$0xff] %v2242_v45  ;;  %v2259_v45 = vld [vmem:[#allocation17 + $0x178] sm:$0xff] }
 0x123   :  { %2764 = vst [vmem:[#allocation111_spill] sm:$0xff] %v2247_v57  ;;  %721 = vmatpush.msra.mxu1 %v2250_v43  ;;  %v2262_v57 = vld [vmem:[#allocation17 + $0x160] sm:$0xff] }
 0x150   :  { %v453_v41 = vpop.f32.mrf.mxu2 }
 0x151   :  { %610 = vmatmul.f32.vlgmr.msrb.gmra.mxu1 %v453_v41 }
 0x152   :  { %972 = vmatpush.msrb.mxu1 %v1937_v55  ;;  %v2266_v55 = vld [vmem:[#allocation17 + $0x148] sm:$0xff] }
 0x154   :  { %973 = vmatpush.msrb.mxu1 %v1942_v58  ;;  %v2789_v58 = vld [vmem:[#allocation45_spill] sm:$0xff] }
 0x156   :  { %974 = vmatpush.msrb.mxu1 %v1948_v61  ;;  %v2790_v61 = vld [vmem:[#allocation99_spill] sm:$0xff] }
 0x158   :  { %v2257_v59 = vpop.f32.mrf.mxu3  ;;  %v499_v54 = vpop.f32.mrf.mxu2  ;;  %975 = vmatpush.msrb.mxu1 %v1956_v46 }
 0x159   :  { %541 = vmatmul.f32.vlgmr.msra.gmra.mxu2 %v499_v54  ;;  %564 = vmatmul.f32.vlgmr.msra.gmra.mxu3 %v499_v54 }
 0x15a   :  { %587 = vmatmul.f32.vlgmr.msrb.gmra.mxu0 %v499_v54  ;;  %613 = vmatmul.f32.gmra.mxu1 %v2257_v59  ;;  %v2275_v54 = vld [vmem:[#allocation17 + $0x130] sm:$0xff] }
 0x15b   :  { %729 = vmatpush.msra.mxu2 %v2259_v45  ;;  %846 = vmatpush.msra.mxu3 %v1816_v0 }
 0x15c   :  { %869 = vmatpush.msrb.mxu0 %v1821_v2  ;;  %976 = vmatpush.msrb.mxu1 %v1961_v42  ;;  %v2280_v2 = vld [vmem:[#allocation17 + $0x118] sm:$0xff] }
 0x15d   :  { %730 = vmatpush.msra.mxu2 %v2262_v57  ;;  %847 = vmatpush.msra.mxu3 %v1818_v1  ;;  %v2283_v1 = vld [vmem:[#allocation17 + $0x100] sm:$0xff] }
 0x15e   :  { %870 = vmatpush.msrb.mxu0 %v1826_v4  ;;  %977 = vmatpush.msrb.mxu1 %v1968_v52  ;;  %v2295_v4 = vld [vmem:[#allocation17 + $0xd0] sm:$0xff] }
 0x15f   :  { %731 = vmatpush.msra.mxu2 %v2266_v55  ;;  %848 = vmatpush.msra.mxu3 %v1823_v3  ;;  %v2289_v3 = vld [vmem:[#allocation17 + $0xe8] sm:$0xff] }
 0x160   :  { %v522_v0 = vpop.f32.mrf.mxu3  ;;  %871 = vmatpush.msrb.mxu0 %v1829_v5  ;;  %978 = vmatpush.msrb.mxu1 %v1977_v62  ;;  %v2301_v5 = vld [vmem:[#allocation17 + $0xb8] sm:$0xff] }
 0x161   :  { %544 = vmatmul.f32.gmra.mxu2 %v522_v0  ;;  %567 = vmatmul.f32.gmra.mxu3 %v522_v0 }
 0x162   :  { %590 = vmatmul.f32.gmra.mxu0 %v522_v0  ;;  %732 = vmatpush.msra.mxu2 %v2275_v54 }
 0x163   :  { %722 = vmatmul.f32.vlgmr.msra.gmra.mxu1 %v1907_v31  ;;  %849 = vmatpush.msra.mxu3 %v1831_v6  ;;  %v2305_v6 = vld [vmem:[#allocation17 + $0xa0] sm:$0xff] }
 0x164   :  { %733 = vmatpush.msra.mxu2 %v2280_v2  ;;  %872 = vmatpush.msrb.mxu0 %v1835_v7  ;;  %v2311_v7 = vld [vmem:[#allocation17 + $0x88] sm:$0xff] }
 0x165   :  { %850 = vmatpush.msra.mxu3 %v1837_v8  ;;  %979 = vmatpush.msrb.mxu1 %v1988_v40  ;;  %v2317_v8 = vld [vmem:[#allocation17 + $0x70] sm:$0xff] }
 0x166   :  { %734 = vmatpush.msra.mxu2 %v2283_v1  ;;  %873 = vmatpush.msrb.mxu0 %v1841_v9  ;;  %v2325_v9 = vld [vmem:[#allocation17 + $0x58] sm:$0xff] }
 0x167   :  { %851 = vmatpush.msra.mxu3 %v1843_v10  ;;  %980 = vmatpush.msrb.mxu1 %v1998_v51  ;;  %v2329_v10 = vld [vmem:[#allocation17 + $0x40] sm:$0xff] }
 0x168   :  { %735 = vmatpush.msra.mxu2 %v2289_v3  ;;  %874 = vmatpush.msrb.mxu0 %v1847_v11  ;;  %v2335_v11 = vld [vmem:[#allocation17 + $0x28] sm:$0xff] }
 0x169   :  { %633 = vmatmul.f32.vlgmr.msrb.gmra.mxu2 %v453_v41  ;;  %656 = vmatmul.f32.vlgmr.msrb.gmra.mxu3 %v453_v41  ;;  %v2788_v41 = vld [vmem:[#allocation95_spill] sm:$0xff] }
 0x16a   :  { %699 = vmatmul.f32.vlgmr.msra.gmra.mxu0 %v1907_v31  ;;  %736 = vmatpush.msra.mxu2 %v2295_v4 }
 0x16b   :  { %725 = vmatmul.f32.gmra.mxu1 %v1916_v33  ;;  %852 = vmatpush.msra.mxu3 %v1849_v12  ;;  %v2341_v12 = vld [vmem:[#allocation17 + $0x10] sm:$0xff] }
 0x16c   :  { %737 = vmatpush.msra.mxu2 %v2301_v5  ;;  %875 = vmatpush.msrb.mxu0 %v1853_v13  ;;  %v2765_v13 = vld [vmem:[#allocation55_spill] sm:$0xff] }
 0x16d   :  { %853 = vmatpush.msra.mxu3 %v1855_v14  ;;  %981 = vmatpush.msrb.mxu1 %v2006_v63  ;;  %v2766_v14 = vld [vmem:[#allocation27_spill] sm:$0xff] }
 0x16e   :  { %738 = vmatpush.msra.mxu2 %v2305_v6  ;;  %876 = vmatpush.msrb.mxu0 %v1859_v15  ;;  %v2767_v15 = vld [vmem:[#allocation57_spill] sm:$0xff] }
 0x16f   :  { %854 = vmatpush.msra.mxu3 %v1861_v16  ;;  %982 = vmatpush.msrb.mxu1 %v2015_v53  ;;  %v2768_v16 = vld [vmem:[#allocation28_spill] sm:$0xff]  ;;  %v328_v53 = vld [vmem:[%s2591_s9] sm:$0x7]  ;;  %s1696_s9 = smov [#allocation19]  }
 0x170   :  { %739 = vmatpush.msra.mxu2 %v2311_v7  ;;  %877 = vmatpush.msrb.mxu0 %v1865_v17  ;;  %v2769_v17 = vld [vmem:[#allocation60_spill] sm:$0xff]  ;;  %v2403_v63 = vperm.slane %v328_v53, 0 }
 0x171   :  { %636 = vmatmul.f32.gmra.mxu2 %v2257_v59  ;;  %659 = vmatmul.f32.gmra.mxu3 %v2257_v59 }
 0x172   :  { %702 = vmatmul.f32.gmra.mxu0 %v1916_v33  ;;  %740 = vmatpush.msra.mxu2 %v2317_v8 }
 0x173   :  { %855 = vmatpush.msra.mxu3 %v1867_v18  ;;  %878 = vmatpush.msrb.mxu0 %v1871_v19  ;;  %v2770_v18 = vld [vmem:[#allocation29_spill] sm:$0xff]  ;;  %v2771_v19 = vld [vmem:[#allocation62_spill] sm:$0xff] }
 0x174   :  { %741 = vmatpush.msra.mxu2 %v2325_v9  ;;  %983 = vmatpush.msrb.mxu1 %v2024_v49 }
 0x175   :  { %856 = vmatpush.msra.mxu3 %v1873_v20  ;;  %879 = vmatpush.msrb.mxu0 %v1877_v21  ;;  %v2772_v20 = vld [vmem:[#allocation30_spill] sm:$0xff]  ;;  %v2773_v21 = vld [vmem:[#allocation64_spill] sm:$0xff] }
 0x176   :  { %742 = vmatpush.msra.mxu2 %v2329_v10  ;;  %984 = vmatpush.msrb.mxu1 %v2031_v56  ;;  %v377_v56 = vld [vmem:[%s2593_s11] sm:$0x7]  ;;  %s1285_s11 = sshll.u32 %s1696_s9, 4  ;;  %s1286_s11 = int_to_ptr.vmem [resolvable:$true] %s1285_s11 }
 0x177   :  { %857 = vmatpush.msra.mxu3 %v1879_v22  ;;  %880 = vmatpush.msrb.mxu0 %v1883_v23  ;;  %v2774_v22 = vld [vmem:[#allocation31_spill] sm:$0xff]  ;;  %v2775_v23 = vld [vmem:[#allocation68_spill] sm:$0xff]  ;;  %v2405_v40 = vperm.slane %v377_v56, 0  ;;  %v2409_v0 = vperm.slane %v377_v56, 1 }
 0x178   :  { %743 = vmatpush.msra.mxu2 %v2335_v11  ;;  %985 = vmatpush.msrb.mxu1 %v2038_v50 }
 0x179   :  { %858 = vmatpush.msra.mxu3 %v1885_v24  ;;  %881 = vmatpush.msrb.mxu0 %v1889_v25  ;;  %v2776_v24 = vld [vmem:[#allocation32_spill] sm:$0xff] }
 0x17a   :  { %744 = vmatpush.msra.mxu2 %v2341_v12  ;;  %986 = vmatpush.msrb.mxu1 %v2044_v37  ;;  %v2777_v25 = vld [vmem:[#allocation72_spill] sm:$0xff] }
 0x17b   :  { %745 = vmatmul.f32.vlgmr.msra.gmra.mxu2 %v1907_v31  ;;  %859 = vmatpush.msra.mxu3 %v1891_v26  ;;  %v2778_v26 = vld [vmem:[#allocation33_spill] sm:$0xff]  ;;  %v2783_v31 = vld [vmem:[#allocation84_spill] sm:$0xff] }
 0x17c   :  { %882 = vmatpush.msrb.mxu0 %v1895_v27  ;;  %987 = vmatpush.msrb.mxu1 %v2050_v48  ;;  %v2779_v27 = vld [vmem:[#allocation76_spill] sm:$0xff] }
 0x17d   :  { %860 = vmatpush.msra.mxu3 %v1897_v28  ;;  %v2780_v28 = vld [vmem:[#allocation34_spill] sm:$0xff] }
 0x17e   :  { %883 = vmatpush.msrb.mxu0 %v1901_v29  ;;  %1064 = vmatpush.msra.mxu1 %v2054_v36  ;;  %v2781_v29 = vld [vmem:[#allocation80_spill] sm:$0xff] }
 0x17f   :  { %861 = vmatpush.msra.mxu3 %v1903_v30  ;;  %v2782_v30 = vld [vmem:[#allocation36_spill] sm:$0xff] }
 0x180   :  { %884 = vmatpush.msrb.mxu0 %v1909_v32  ;;  %1065 = vmatpush.msra.mxu1 %v2060_v34  ;;  %v2784_v32 = vld [vmem:[#allocation38_spill] sm:$0xff]  ;;  %v2791_v34 = vld [vmem:[#allocation65_spill] sm:$0xff] }
 0x182   :  { %1041 = vmatpush.msra.mxu0 %v1920_v38  ;;  %1066 = vmatpush.msra.mxu1 %v2765_v13  ;;  %v2786_v38 = vld [vmem:[#allocation91_spill] sm:$0xff] }
 0x183   :  { %748 = vmatmul.f32.gmra.mxu2 %v1916_v33  ;;  %v2785_v33 = vld [vmem:[#allocation41_spill] sm:$0xff] }
 0x184   :  { %1042 = vmatpush.msra.mxu0 %v1923_v39  ;;  %1067 = vmatpush.msra.mxu1 %v2767_v15  ;;  %v2787_v39 = vld [vmem:[#allocation43_spill] sm:$0xff] }
 0x186   :  { %1043 = vmatpush.msra.mxu0 %v2766_v14  ;;  %1068 = vmatpush.msra.mxu1 %v2769_v17  ;;  %v2411_v14 = vperm.slane %v328_v53, 1 }
 0x188   :  { %1044 = vmatpush.msra.mxu0 %v2768_v16  ;;  %1069 = vmatpush.msra.mxu1 %v2771_v19 }
 0x18a   :  { %1045 = vmatpush.msra.mxu0 %v2770_v18  ;;  %1070 = vmatpush.msra.mxu1 %v2773_v21 }
 0x18c   :  { %1046 = vmatpush.msra.mxu0 %v2772_v20  ;;  %1071 = vmatpush.msra.mxu1 %v2775_v23 }
 0x18e   :  { %1047 = vmatpush.msra.mxu0 %v2774_v22  ;;  %1072 = vmatpush.msra.mxu1 %v2777_v25 }
 0x190   :  { %1048 = vmatpush.msra.mxu0 %v2776_v24  ;;  %1073 = vmatpush.msra.mxu1 %v2779_v27 }
 0x192   :  { %1049 = vmatpush.msra.mxu0 %v2778_v26  ;;  %1074 = vmatpush.msra.mxu1 %v2781_v29 }
 0x194   :  { %1050 = vmatpush.msra.mxu0 %v2780_v28  ;;  %1075 = vmatpush.msra.mxu1 %v2783_v31 }
 0x196   :  { %1051 = vmatpush.msra.mxu0 %v2782_v30  ;;  %1076 = vmatpush.msra.mxu1 %v2166_v60 }
 0x198   :  { %1052 = vmatpush.msra.mxu0 %v2784_v32  ;;  %1077 = vmatpush.msra.mxu1 %v2786_v38 }
 0x19a   :  { %1053 = vmatpush.msra.mxu0 %v2785_v33  ;;  %1078 = vmatpush.msra.mxu1 %v2788_v41 }
 0x19c   :  { %1054 = vmatpush.msra.mxu0 %v2787_v39  ;;  %1079 = vmatpush.msra.mxu1 %v2790_v61 }
 0x19e   :  { %1055 = vmatpush.msra.mxu0 %v2789_v58 }
 0x1a0   :  { %1056 = vmatpush.msra.mxu0 %v2791_v34 }
 0x1ce   :  { %v611_v46 = vpop.f32.mrf.mxu1 }
 0x1d7   :  { %v2393_v42 = vpop.f32.mrf.mxu0  ;;  %v614_v60 = vpop.f32.mrf.mxu1 }
 0x1dc   :  { %v542_v50 = vpop.f32.mrf.mxu2  ;;  %v565_v59 = vpop.f32.mrf.mxu3 }
 0x1dd   :  { %v612_v62 = vadd.f32 %v611_v46, %v542_v50 }
 0x1df   :  { %v2395_v52 = vpop.f32.mrf.mxu0  ;;  %v670_v49 = vadd.f32 %v2403_v63, %v612_v62 }
 0x1e0   :  { %v723_v36 = vpop.f32.mrf.mxu1 }
 0x1e1   :  { %v724_v19 = vadd.f32 %v723_v36, %v2409_v0 }
 0x1e4   :  { %v545_v37 = vpop.f32.mrf.mxu2  ;;  %v568_v27 = vpop.f32.mrf.mxu3 }
 0x1e5   :  { %v615_v15 = vadd.f32 %v614_v60, %v545_v37 }
 0x1e7   :  { %v700_v48 = vpop.f32.mrf.mxu0  ;;  %v673_v22 = vadd.f32 %v2403_v63, %v615_v15 }
 0x1e8   :  { %v701_v51 = vadd.f32 %v700_v48, %v2405_v40  ;;  %v726_v26 = vpop.f32.mrf.mxu1  ;;  %v2422_v48 = vperm.slane %v377_v56, 2 }
 0x1e9   :  { %v727_v38 = vadd.f32 %v726_v26, %v2409_v0 }
 0x1ea   :  { %v752_v13 = vadd.f32 %v701_v51, %v670_v49 }
 0x1ec   :  { %v1309_v16 = vmul.f32 -1.442695, %v752_v13  ;;  %v634_v17 = vpop.f32.mrf.mxu2  ;;  %v657_v60 = vpop.f32.mrf.mxu3 }
 0x1ed   :  { %v635_v18 = vadd.f32 %v634_v17, %v565_v59  ;;  %v2425_v17 = vperm.slane %v328_v53, 2 }
 0x1ee   :  { %1338 = vpow2.f32 %v1309_v16  ;;  %v658_v16 = vadd.f32 %v657_v60, %v2393_v42 }
 0x1ef   :  { %v671_v20 = vadd.f32 %v2411_v14, %v635_v18  ;;  %v703_v21 = vpop.f32.mrf.mxu0 }
 0x1f0   :  { %v704_v23 = vadd.f32 %v703_v21, %v2405_v40 }
 0x1f1   :  { %v792_v24 = vadd.f32 %v724_v19, %v671_v20 }
 0x1f2   :  { %v753_v25 = vadd.f32 %v704_v23, %v673_v22 }
 0x1f3   :  { %v1311_v28 = vmul.f32 -1.442695, %v792_v24 }
 0x1f4   :  { %v1339_v29 = vpop.eup %1338  ;;  %v1310_v30 = vmul.f32 -1.442695, %v753_v25  ;;  %v637_v31 = vpop.f32.mrf.mxu2 }
 0x1f5   :  { %v760_v32 = vadd.f32 1.0, %v1339_v29  ;;  %1340 = vpow2.f32 %v1311_v28  ;;  %v638_v33 = vadd.f32 %v637_v31, %v568_v27  ;;  %v660_v26 = vpop.f32.mrf.mxu3  ;;  %v672_v27 = vadd.f32 %v2425_v17, %v658_v16 }
 0x1f6   :  { %1342 = vpow2.f32 %v1310_v30 }
 0x1f7   :  { %1344 = vrcp.f32 %v760_v32  ;;  %v674_v39 = vadd.f32 %v2411_v14, %v638_v33  ;;  %v773_v36 = vand.u32 2147483648, %v760_v32  ;;  %v771_v13 = vand.u32 2147483647, %v760_v32 }
 0x1f8   :  { %vm767_vm2 = vweird.f32 %v760_v32  ;;  %v661_v33 = vadd.f32 %v660_v26, %v2395_v52 }
 0x1f9   :  { %v793_v41 = vadd.f32 %v727_v38, %v674_v39  ;;  %v774_v23 = vor.u32 1.1754944e-38, %v773_v36  ;;  %vm772_vm4 = vcmp.eq.f32.partialorder %v771_v13, 8.507059e+37 }
 0x1fa   :  { %v675_v16 = vadd.f32 %v2425_v17, %v661_v33  ;;  %v2793_v33 = vld [vmem:[#allocation75_spill] sm:$0xff] }
 0x1fb   :  { %v1341_v58 = vpop.eup %1340  ;;  %v1312_v61 = vmul.f32 -1.442695, %v793_v41 }
 0x1fc   :  { %v1343_v34 = vpop.eup %1342  ;;  %v800_v46 = vadd.f32 1.0, %v1341_v58 }
 0x1fd   :  { %v1345_v50 = vpop.eup %1344  ;;  %v2419_v62 = vadd.f32 1.0, %v1343_v34  ;;  %1346 = vpow2.f32 %v1312_v61 }
 0x1fe   :  { %1348 = vrcp.f32 %v800_v46  ;;  %v763_v37 = vmul.f32 %v1345_v50, %v760_v32  ;;  %v746_v49 = vpop.f32.mrf.mxu2  ;;  %vm768_vm1 = vweird.f32 %v1345_v50  ;;  %v813_v28 = vand.u32 2147483648, %v800_v46 }
 0x1ff   :  { %1350 = vrcp.f32 %v2419_v62  ;;  %v747_v20 = vadd.f32 %v746_v49, %v2422_v48  ;;  %vm769_vm3 = vmor %vm767_vm2, %vm768_vm1  ;;  %v811_v29 = vand.u32 2147483647, %v800_v46  ;;  %vm807_vm6 = vweird.f32 %v800_v46 }
 0x200   :  { %v764_v51 = vsub.f32 1.0, %v763_v37  ;;  %v788_v41 = vand.u32 2147483648, %v2419_v62  ;;  %v786_v34 = vand.u32 2147483647, %v2419_v62  ;;  %v814_v60 = vor.u32 1.1754944e-38, %v813_v28 }
 0x201   :  { %vm812_vm9 = vcmp.eq.f32.partialorder %v811_v29, 8.507059e+37  ;;  %vm782_vm10 = vweird.f32 %v2419_v62 }
 0x202   :  { %v765_v59 = vmul.f32 %v1345_v50, %v764_v51  ;;  %v789_v36 = vor.u32 1.1754944e-38, %v788_v41  ;;  %vm787_vm12 = vcmp.eq.f32.partialorder %v786_v34, 8.507059e+37  ;;  %v2794_v41 = vld [vmem:[#allocation79_spill] sm:$0xff] }
 0x203   :  { %v1347_v15 = vpop.eup %1346  ;;  %v2796_v34 = vld [vmem:[#allocation87_spill] sm:$0xff] }
 0x204   :  { %v1349_v18 = vpop.eup %1348  ;;  %v2427_v19 = vadd.f32 1.0, %v1347_v15  ;;  %v766_v21 = vadd.f32 %v1345_v50, %v765_v59 }
 0x205   :  { %v1351_v56 = vpop.eup %1350  ;;  %v803_v22 = vmul.f32 %v1349_v18, %v800_v46  ;;  %vm808_vm5 = vweird.f32 %v1349_v18 }
 0x206   :  { %1352 = vrcp.f32 %v2427_v19  ;;  %v770_v24 = vsel %vm769_vm3, %v1345_v50, %v766_v21  ;;  %v778_v53 = vmul.f32 %v1351_v56, %v2419_v62  ;;  %v749_v39 = vpop.f32.mrf.mxu2  ;;  %vm783_vm7 = vweird.f32 %v1351_v56  ;;  %vm809_vm8 = vmor %vm807_vm6, %vm808_vm5 }
 0x207   :  { %v804_v25 = vsub.f32 1.0, %v803_v22  ;;  %v775_v42 = vsel %vm772_vm4, %v774_v23, %v770_v24  ;;  %v750_v52 = vadd.f32 %v749_v39, %v2422_v48  ;;  %vm784_vm11 = vmor %vm782_vm10, %vm783_vm7  ;;  %v826_v62 = vand.u32 2147483647, %v2427_v19  ;;  %v1378_v23 = vld [vmem:[#allocation7] sm:$0xff] }
 0x208   :  { %v832_v30 = vmul.f32 %v775_v42, %v747_v20  ;;  %v779_v32 = vsub.f32 1.0, %v778_v53  ;;  %v828_v20 = vand.u32 2147483648, %v2427_v19  ;;  %vm822_vm14 = vweird.f32 %v2427_v19 }
 0x209   :  { %v805_v31 = vmul.f32 %v1349_v18, %v804_v25  ;;  %vm827_vm1 = vcmp.eq.f32.partialorder %v826_v62, 8.507059e+37 }
 0x20a   :  { %v834_v38 = vadd.f32 %v832_v30, %v672_v27  ;;  %v780_v61 = vmul.f32 %v1351_v56, %v779_v32  ;;  %v1379_v32 = vld [vmem:[#allocation7 + $0x8] sm:$0xff] }
 0x20b   :  { %v806_v58 = vadd.f32 %v1349_v18, %v805_v31  ;;  %v2792_v31 = vld [vmem:[#allocation71_spill] sm:$0xff] }
 0x20c   :  { %v1353_v50 = vpop.eup %1352  ;;  %1354 = vtanh.f32 %v834_v38  ;;  %v781_v49 = vadd.f32 %v1351_v56, %v780_v61  ;;  %v2795_v61 = vld [vmem:[#allocation83_spill] sm:$0xff] }
 0x20d   :  { %v818_v46 = vmul.f32 %v1353_v50, %v2427_v19  ;;  %v810_v37 = vsel %vm809_vm8, %v1349_v18, %v806_v58  ;;  %vm823_vm13 = vweird.f32 %v1353_v50 }
 0x20e   :  { %v815_v51 = vsel %vm812_vm9, %v814_v60, %v810_v37  ;;  %v785_v15 = vsel %vm784_vm11, %v1351_v56, %v781_v49  ;;  %vm824_vm15 = vmor %vm822_vm14, %vm823_vm13  ;;  %v829_v56 = vor.u32 1.1754944e-38, %v828_v20  ;;  %v2798_v60 = vld [vmem:[#allocation94_spill] sm:$0xff] }
 0x20f   :  { %v819_v59 = vsub.f32 1.0, %v818_v46  ;;  %v838_v13 = vsub.f32 1.0, %v815_v51  ;;  %v790_v21 = vsel %vm787_vm12, %v789_v36, %v785_v15  ;;  %v2799_v46 = vld [vmem:[#allocation98_spill] sm:$0xff] }
 0x210   :  { %v833_v24 = vmul.f32 %v790_v21, %v750_v52  ;;  %v2800_v37 = vld [vmem:[#allocation102_spill] sm:$0xff]  ;;  %v2801_v52 = vld [vmem:[#allocation105_spill] sm:$0xff] }
 0x211   :  { %v820_v22 = vmul.f32 %v1353_v50, %v819_v59  ;;  %v840_v18 = vmul.f32 %v1378_v23, %v838_v13  ;;  %v2802_v49 = vld [vmem:[#allocation110_spill] sm:$0xff]  ;;  %v1380_v13 = vld [vmem:[#allocation10] ss:$0 sm:$0xff]  ;;  %v2805_v23 = vld [vmem:[#allocation37_spill] sm:$0xff] }
 0x212   :  { %v1355_v25 = vpop.eup %1354  ;;  %v835_v53 = vadd.f32 %v833_v24, %v675_v16  ;;  %v1381_v16 = vld [vmem:[#allocation13] ss:$0 sm:$0xff]  ;;  %v1382_v21 = vld [vmem:[#allocation2] sm:$0xff]  ;;  %v1385_v24 = vld [vmem:[#allocation2 + $0x8] sm:$0xff] }
 0x213   :  { %v842_v26 = vmul.f32 %v1355_v25, %v815_v51  ;;  %v821_v42 = vadd.f32 %v1353_v50, %v820_v22  ;;  %v2803_v51 = vld [vmem:[#allocation111_spill] sm:$0xff]  ;;  %v2806_v25 = vld [vmem:[#allocation40_spill] sm:$0xff] }
 0x214   :  { %1356 = vtanh.f32 %v835_v53  ;;  %v1387_v53 = vld [vmem:[#allocation16 + $0x160] sm:$0xff] }
 0x215   :  { %v2443_v27 = vadd.f32 %v842_v26, %v840_v18  ;;  %v825_v28 = vsel %vm824_vm15, %v1353_v50, %v821_v42  ;;  %v2797_v50 = vld [vmem:[#allocation90_spill] sm:$0xff]  ;;  %v1384_v18 = vld [vmem:[#allocation5] sm:$0xff] }
 0x216   :  { %v830_v29 = vsel %vm827_vm1, %v829_v56, %v825_v28  ;;  %v1386_v26 = vld [vmem:[#allocation16 + $0x178] sm:$0xff]  ;;  %v2807_v42 = vld [vmem:[#allocation42_spill] sm:$0xff] }
 0x217   :  { %v839_v30 = vsub.f32 1.0, %v830_v29  ;;  %862 = vmatmul.f32.vlgmr.msra.gmra.mxu3 %v2443_v27  ;;  %885 = vmatmul.f32.vlgmr.msrb.gmra.mxu0 %v2443_v27  ;;  %v2808_v56 = vld [vmem:[#allocation44_spill] sm:$0xff]  ;;  %v1388_v28 = vld [vmem:[#allocation16 + $0x148] sm:$0xff] }
 0x218   :  { %1139 = vmatpush.msrb.mxu0 %v2792_v31  ;;  %v2811_v31 = vld [vmem:[#allocation48_spill] sm:$0xff] }
 0x219   :  { %v841_v19 = vmul.f32 %v1379_v32, %v839_v30  ;;  %v2810_v30 = vld [vmem:[#allocation39_spill] sm:$0xff] }
 0x21a   :  { %1140 = vmatpush.msrb.mxu0 %v2793_v33  ;;  %v1357_v38 = vpop.eup %1356  ;;  %v1389_v32 = vld [vmem:[#allocation16 + $0x130] sm:$0xff]  ;;  %v1390_v33 = vld [vmem:[#allocation16 + $0x118] sm:$0xff] }
 0x21b   :  { %v843_v39 = vmul.f32 %v1357_v38, %v830_v29  ;;  %v2809_v29 = vld [vmem:[#allocation46_spill] sm:$0xff] }
 0x21c   :  { %1141 = vmatpush.msrb.mxu0 %v2794_v41  ;;  %v2813_v38 = vld [vmem:[#allocation50_spill] sm:$0xff]  ;;  %v2814_v41 = vld [vmem:[#allocation51_spill] sm:$0xff] }
 0x21d   :  { %v2450_v58 = vadd.f32 %v843_v39, %v841_v19  ;;  %v2812_v19 = vld [vmem:[#allocation49_spill] sm:$0xff] }
 0x21e   :  { %1142 = vmatpush.msrb.mxu0 %v2795_v61  ;;  %v1391_v39 = vld [vmem:[#allocation16 + $0x100] sm:$0xff]  ;;  %v1392_v61 = vld [vmem:[#allocation16 + $0xe8] sm:$0xff] }
 0x21f   :  { %865 = vmatmul.f32.gmra.mxu3 %v2450_v58  ;;  %888 = vmatmul.f32.gmra.mxu0 %v2450_v58 }
 0x220   :  { %1143 = vmatpush.msrb.mxu0 %v2796_v34  ;;  %v2815_v34 = vld [vmem:[#allocation52_spill] sm:$0xff] }
 0x222   :  { %1144 = vmatpush.msrb.mxu0 %v2797_v50  ;;  %v1393_v50 = vld [vmem:[#allocation16 + $0xd0] sm:$0xff] }
 0x224   :  { %1145 = vmatpush.msrb.mxu0 %v2798_v60  ;;  %v2816_v60 = vld [vmem:[#allocation53_spill] sm:$0xff] }
 0x226   :  { %1146 = vmatpush.msrb.mxu0 %v2799_v46  ;;  %v1394_v46 = vld [vmem:[#allocation16 + $0xb8] sm:$0xff] }
 0x228   :  { %1147 = vmatpush.msrb.mxu0 %v2800_v37  ;;  %v2817_v37 = vld [vmem:[#allocation54_spill] sm:$0xff] }
 0x22a   :  { %1148 = vmatpush.msrb.mxu0 %v2801_v52  ;;  %v1395_v52 = vld [vmem:[#allocation16 + $0xa0] sm:$0xff] }
 0x22c   :  { %1149 = vmatpush.msrb.mxu0 %v2227_v35  ;;  %v2804_v35 = vld [vmem:[#allocation35_spill] sm:$0xff] }
 0x22e   :  { %1150 = vmatpush.msrb.mxu0 %v2236_v47  ;;  %v1383_v47 = vld [vmem:[#allocation16 + $0x170] sm:$0xff] }
 0x230   :  { %1151 = vmatpush.msrb.mxu0 %v2802_v49  ;;  %v2818_v49 = vld [vmem:[#allocation56_spill] sm:$0xff] }
 0x232   :  { %1152 = vmatpush.msrb.mxu0 %v2244_v44 }
 0x234   :  { %1153 = vmatpush.msrb.mxu0 %v2803_v51  ;;  %v1396_v51 = vld [vmem:[#allocation16 + $0x88] sm:$0xff] }
 0x236   :  { %1154 = vmatpush.msrb.mxu0 %v2250_v43 }
 0x294   :  { %v886_v36 = vpop.f32.mrf.mxu0 }
 0x295   :  { %v887_v20 = vadd.f32 %v1381_v16, %v886_v36  ;;  %v2819_v36 = vld [vmem:[#allocation58_spill] sm:$0xff] }
 0x29a   :  { %v863_v59 = vpop.f32.mrf.mxu3 }
 0x29b   :  { %v864_v15 = vadd.f32 %v1380_v13, %v863_v59  ;;  %v1397_v59 = vld [vmem:[#allocation16 + $0x70] sm:$0xff] }
 0x29c   :  { %v889_v44 = vpop.f32.mrf.mxu0 }
 0x29d   :  { %907 = vmatpush.msrb.mxu2 %v864_v15  ;;  %v890_v43 = vadd.f32 %v1381_v16, %v889_v44  ;;  %v1398_v15 = vld [vmem:[#allocation16 + $0x58] sm:$0xff]  ;;  %v2821_v16 = vld [vmem:[#allocation61_spill] sm:$0xff]  ;;  %v1401_v44 = vld [vmem:[#allocation16 + $0x10] sm:$0xff] }
 0x29e   :  { %1313 = vmatmul.msk.f32.vlgmr.msrb.gmra.mxu2 %vm432_vm0, %v1382_v21  ;;  %v2822_v21 = vld [vmem:[#allocation63_spill] sm:$0xff] }
 0x29f   :  { %947 = vmatpush.msra.mxu2 %v887_v20  ;;  %v1399_v20 = vld [vmem:[#allocation16 + $0x40] sm:$0xff] }
 0x2a1   :  { %995 = vmatpush.msrb.mxu2 %v1383_v47  ;;  %v1400_v47 = vld [vmem:[#allocation16 + $0x28] sm:$0xff] }
 0x2a2   :  { %v866_v62 = vpop.f32.mrf.mxu3 }
 0x2a3   :  { %996 = vmatpush.msrb.mxu2 %v2804_v35  ;;  %v867_v22 = vadd.f32 %v1380_v13, %v866_v62  ;;  %v2820_v13 = vld [vmem:[#allocation59_spill] sm:$0xff]  ;;  %v2823_v35 = vld [vmem:[#allocation66_spill] sm:$0xff]  ;;  %v2824_v62 = vld [vmem:[#allocation69_spill] sm:$0xff] }
 0x2a5   :  { %997 = vmatpush.msrb.mxu2 %v2805_v23  ;;  %927 = vmatpush.msrb.mxu3 %v867_v22  ;;  %v1402_v22 = vld [vmem:[#allocation17 + $0x168] sm:$0xff]  ;;  %v2825_v23 = vld [vmem:[#allocation73_spill] sm:$0xff] }
 0x2a6   :  { %1315 = vmatmul.msk.f32.vlgmr.msra.gmra.mxu2 %vm432_vm0, %v1384_v18  ;;  %1314 = vmatmul.msk.f32.vlgmr.msrb.gmra.mxu3 %vm432_vm0, %v1385_v24  ;;  %v2826_v18 = vld [vmem:[#allocation77_spill] sm:$0xff]  ;;  %v2827_v24 = vld [vmem:[#allocation47_spill] sm:$0xff] }
 0x2a7   :  { %998 = vmatpush.msrb.mxu2 %v2806_v25  ;;  %967 = vmatpush.msra.mxu3 %v890_v43  ;;  %v1403_v43 = vld [vmem:[#allocation17 + $0x150] sm:$0xff]  ;;  %v2828_v25 = vld [vmem:[#allocation81_spill] sm:$0xff] }
 0x2a9   :  { %1018 = vmatpush.msrb.mxu3 %v1386_v26  ;;  %999 = vmatpush.msrb.mxu2 %v2807_v42  ;;  %v2829_v26 = vld [vmem:[#allocation67_spill] sm:$0xff]  ;;  %v2830_v42 = vld [vmem:[#allocation85_spill] sm:$0xff] }
 0x2ab   :  { %1019 = vmatpush.msrb.mxu3 %v1387_v53  ;;  %1000 = vmatpush.msrb.mxu2 %v2808_v56  ;;  %v2831_v53 = vld [vmem:[#allocation70_spill] sm:$0xff]  ;;  %v2832_v56 = vld [vmem:[#allocation88_spill] sm:$0xff] }
 0x2ad   :  { %1020 = vmatpush.msrb.mxu3 %v1388_v28  ;;  %1001 = vmatpush.msrb.mxu2 %v2809_v29  ;;  %v2833_v28 = vld [vmem:[#allocation74_spill] sm:$0xff]  ;;  %v2834_v29 = vld [vmem:[#allocation92_spill] sm:$0xff] }
 0x2ae   :  { %1316 = vmatmul.msk.f32.vlgmr.msra.gmra.mxu3 %vm432_vm0, %v2810_v30  ;;  %v2835_v30 = vld [vmem:[#allocation78_spill] sm:$0xff] }
 0x2af   :  { %1002 = vmatpush.msrb.mxu2 %v2811_v31  ;;  %1021 = vmatpush.msrb.mxu3 %v1389_v32  ;;  %v2836_v31 = vld [vmem:[#allocation96_spill] sm:$0xff]  ;;  %v2837_v32 = vld [vmem:[#allocation82_spill] sm:$0xff] }
 0x2b1   :  { %1003 = vmatpush.msrb.mxu2 %v2812_v19  ;;  %1022 = vmatpush.msrb.mxu3 %v1390_v33  ;;  %v2838_v19 = vld [vmem:[#allocation100_spill] sm:$0xff]  ;;  %v2839_v33 = vld [vmem:[#allocation86_spill] sm:$0xff] }
 0x2b3   :  { %1004 = vmatpush.msrb.mxu2 %v2813_v38  ;;  %1023 = vmatpush.msrb.mxu3 %v1391_v39  ;;  %v2840_v38 = vld [vmem:[#allocation103_spill] sm:$0xff]  ;;  %v2841_v39 = vld [vmem:[#allocation89_spill] sm:$0xff] }
 0x2b5   :  { %1005 = vmatpush.msrb.mxu2 %v2814_v41  ;;  %1024 = vmatpush.msrb.mxu3 %v1392_v61  ;;  %v2842_v41 = vld [vmem:[#allocation106_spill] sm:$0xff]  ;;  %v2843_v61 = vld [vmem:[#allocation93_spill] sm:$0xff] }
 0x2b7   :  { %1006 = vmatpush.msrb.mxu2 %v2815_v34  ;;  %1025 = vmatpush.msrb.mxu3 %v1393_v50  ;;  %v2844_v34 = vld [vmem:[#allocation108_spill] sm:$0xff]  ;;  %v2845_v50 = vld [vmem:[#allocation97_spill] sm:$0xff] }
 0x2b9   :  { %1007 = vmatpush.msrb.mxu2 %v2816_v60  ;;  %1026 = vmatpush.msrb.mxu3 %v1394_v46  ;;  %v2846_v60 = vld [vmem:[#allocation101_spill] sm:$0xff]  ;;  %v2847_v46 = vld [vmem:[#allocation104_spill] sm:$0xff] }
 0x2bb   :  { %1008 = vmatpush.msrb.mxu2 %v2817_v37  ;;  %1027 = vmatpush.msrb.mxu3 %v1395_v52  ;;  %v2848_v37 = vld [vmem:[#allocation107_spill] sm:$0xff]  ;;  %v2849_v52 = vld [vmem:[#allocation109_spill] sm:$0xff] }
 0x2bd   :  { %1009 = vmatpush.msrb.mxu2 %v2818_v49  ;;  %1028 = vmatpush.msrb.mxu3 %v1396_v51 }
 0x2bf   :  { %1010 = vmatpush.msrb.mxu2 %v2819_v36  ;;  %1029 = vmatpush.msrb.mxu3 %v1397_v59 }
 0x2c1   :  { %1087 = vmatpush.msra.mxu2 %v2820_v13  ;;  %1030 = vmatpush.msrb.mxu3 %v1398_v15 }
 0x2c3   :  { %1088 = vmatpush.msra.mxu2 %v2821_v16  ;;  %1031 = vmatpush.msrb.mxu3 %v1399_v20 }
 0x2c5   :  { %1089 = vmatpush.msra.mxu2 %v2822_v21  ;;  %1032 = vmatpush.msrb.mxu3 %v1400_v47 }
 0x2c7   :  { %1090 = vmatpush.msra.mxu2 %v2823_v35  ;;  %1033 = vmatpush.msrb.mxu3 %v1401_v44 }
 0x2c9   :  { %1091 = vmatpush.msra.mxu2 %v2824_v62  ;;  %1116 = vmatpush.msra.mxu3 %v1402_v22 }
 0x2cb   :  { %1092 = vmatpush.msra.mxu2 %v2825_v23  ;;  %1117 = vmatpush.msra.mxu3 %v1403_v43 }
 0x2cd   :  { %1093 = vmatpush.msra.mxu2 %v2826_v18  ;;  %1118 = vmatpush.msra.mxu3 %v2827_v24 }
 0x2cf   :  { %1094 = vmatpush.msra.mxu2 %v2828_v25  ;;  %1119 = vmatpush.msra.mxu3 %v2829_v26 }
 0x2d1   :  { %1095 = vmatpush.msra.mxu2 %v2830_v42  ;;  %1120 = vmatpush.msra.mxu3 %v2831_v53 }
 0x2d3   :  { %1096 = vmatpush.msra.mxu2 %v2832_v56  ;;  %1121 = vmatpush.msra.mxu3 %v2833_v28 }
 0x2d5   :  { %1097 = vmatpush.msra.mxu2 %v2834_v29  ;;  %1122 = vmatpush.msra.mxu3 %v2835_v30 }
 0x2d7   :  { %1098 = vmatpush.msra.mxu2 %v2836_v31  ;;  %1123 = vmatpush.msra.mxu3 %v2837_v32 }
 0x2d9   :  { %1099 = vmatpush.msra.mxu2 %v2838_v19  ;;  %1124 = vmatpush.msra.mxu3 %v2839_v33 }
 0x2db   :  { %1100 = vmatpush.msra.mxu2 %v2840_v38  ;;  %1125 = vmatpush.msra.mxu3 %v2841_v39 }
 0x2dd   :  { %1101 = vmatpush.msra.mxu2 %v2842_v41  ;;  %1126 = vmatpush.msra.mxu3 %v2843_v61 }
 0x2df   :  { %1102 = vmatpush.msra.mxu2 %v2844_v34  ;;  %1127 = vmatpush.msra.mxu3 %v2845_v50 }
 0x2e1   :  { %1128 = vmatpush.msra.mxu3 %v2846_v60 }
 0x2e3   :  { %1129 = vmatpush.msra.mxu3 %v2847_v46 }
 0x2e5   :  { %1130 = vmatpush.msra.mxu3 %v2848_v37 }
 0x2e7   :  { %1131 = vmatpush.msra.mxu3 %v2849_v52 }
 0x321   :  { %v909_v49 = vpop.f32.mrf.mxu2 }
 0x322   :  { %1057 = vmatmul.f32.vlgmr.msra.gmra.mxu0 %v909_v49 }
 0x329   :  { %v949_v51 = vpop.f32.mrf.mxu2  ;;  %v929_v36 = vpop.f32.mrf.mxu3 }
 0x32a   :  { %988 = vmatmul.f32.vlgmr.msrb.gmra.mxu1 %v949_v51  ;;  %1011 = vmatmul.f32.vlgmr.msrb.gmra.mxu2 %v949_v51 }
 0x32b   :  { %1034 = vmatmul.f32.vlgmr.msrb.gmra.mxu3 %v949_v51  ;;  %1060 = vmatmul.f32.gmra.mxu0 %v929_v36 }
 0x32c   :  { %1162 = vmatpush.msrb.mxu1 %v2259_v45 }
 0x32e   :  { %1163 = vmatpush.msrb.mxu1 %v2262_v57 }
 0x330   :  { %1164 = vmatpush.msrb.mxu1 %v2266_v55 }
 0x331   :  { %v969_v59 = vpop.f32.mrf.mxu3 }
 0x332   :  { %1165 = vmatpush.msrb.mxu1 %v2275_v54  ;;  %1014 = vmatmul.f32.gmra.mxu2 %v969_v59 }
 0x333   :  { %991 = vmatmul.f32.gmra.mxu1 %v969_v59  ;;  %1037 = vmatmul.f32.gmra.mxu3 %v969_v59 }
 0x334   :  { %1155 = vmatmul.f32.vlgmr.msrb.gmra.mxu0 %v2443_v27  ;;  %1166 = vmatpush.msrb.mxu1 %v2280_v2 }
 0x336   :  { %1167 = vmatpush.msrb.mxu1 %v2283_v1 }
 0x338   :  { %1168 = vmatpush.msrb.mxu1 %v2289_v3 }
 0x33a   :  { %1169 = vmatpush.msrb.mxu1 %v2295_v4  ;;  %1103 = vmatmul.f32.vlgmr.msra.gmra.mxu2 %v909_v49 }
 0x33b   :  { %1080 = vmatmul.f32.vlgmr.msra.gmra.mxu1 %v909_v49  ;;  %1132 = vmatmul.f32.vlgmr.msra.gmra.mxu3 %v2443_v27 }
 0x33c   :  { %1158 = vmatmul.f32.gmra.mxu0 %v2450_v58  ;;  %1170 = vmatpush.msrb.mxu1 %v2301_v5 }
 0x33e   :  { %1171 = vmatpush.msrb.mxu1 %v2305_v6 }
 0x340   :  { %1172 = vmatpush.msrb.mxu1 %v2311_v7 }
 0x342   :  { %1173 = vmatpush.msrb.mxu1 %v2317_v8  ;;  %1106 = vmatmul.f32.gmra.mxu2 %v929_v36 }
 0x343   :  { %1083 = vmatmul.f32.gmra.mxu1 %v929_v36  ;;  %1135 = vmatmul.f32.gmra.mxu3 %v2450_v58 }
 0x344   :  { %1174 = vmatpush.msrb.mxu1 %v2325_v9 }
 0x346   :  { %1175 = vmatpush.msrb.mxu1 %v2329_v10 }
 0x348   :  { %1176 = vmatpush.msrb.mxu1 %v2335_v11 }
 0x34a   :  { %1177 = vmatpush.msrb.mxu1 %v2341_v12 }
 0x34b   :  { %1178 = vmatmul.f32.vlgmr.msrb.gmra.mxu1 %v2443_v27 }
 0x353   :  { %1181 = vmatmul.f32.gmra.mxu1 %v2450_v58 }
 0x39f   :  { %v1058_v57 = vpop.f32.mrf.mxu0 }
 0x3a7   :  { %v989_v45 = vpop.f32.mrf.mxu1 }
 0x3a8   :  { %v1061_v55 = vpop.f32.mrf.mxu0  ;;  %v1059_v7 = vadd.f32 %v1058_v57, %v989_v45 }
 0x3aa   :  { %v1110_v12 = vadd.f32 %v1059_v7, %v2403_v63 }
 0x3ad   :  { %v1012_v1 = vpop.f32.mrf.mxu2 }
 0x3ae   :  { %v1035_v54 = vpop.f32.mrf.mxu3 }
 0x3b0   :  { %v992_v2 = vpop.f32.mrf.mxu1 }
 0x3b1   :  { %v1156_v3 = vpop.f32.mrf.mxu0  ;;  %v1062_v44 = vadd.f32 %v1061_v55, %v992_v2 }
 0x3b2   :  { %v1157_v8 = vadd.f32 %v1156_v3, %v2409_v0 }
 0x3b3   :  { %v1113_v25 = vadd.f32 %v1062_v44, %v2403_v63 }
 0x3b5   :  { %v1015_v13 = vpop.f32.mrf.mxu2 }
 0x3b6   :  { %v2539_v4 = vpop.f32.mrf.mxu3 }
 0x3b8   :  { %v1081_v5 = vpop.f32.mrf.mxu1 }
 0x3b9   :  { %v1082_v6 = vadd.f32 %v1081_v5, %v1012_v1  ;;  %v1159_v20 = vpop.f32.mrf.mxu0 }
 0x3ba   :  { %v1160_v62 = vadd.f32 %v1159_v20, %v2409_v0 }
 0x3bb   :  { %v1111_v9 = vadd.f32 %v1082_v6, %v2411_v14 }
 0x3bd   :  { %v1225_v10 = vadd.f32 %v1157_v8, %v1111_v9  ;;  %v1104_v38 = vpop.f32.mrf.mxu2 }
 0x3be   :  { %v1133_v11 = vpop.f32.mrf.mxu3  ;;  %v1105_v49 = vadd.f32 %v1104_v38, %v1035_v54 }
 0x3bf   :  { %v1319_v15 = vmul.f32 -1.442695, %v1225_v10  ;;  %v1134_v16 = vadd.f32 %v1133_v11, %v2405_v40 }
 0x3c0   :  { %v1084_v21 = vpop.f32.mrf.mxu1  ;;  %v1112_v7 = vadd.f32 %v1105_v49, %v2425_v17 }
 0x3c1   :  { %1358 = vpow2.f32 %v1319_v15  ;;  %v1185_v47 = vadd.f32 %v1134_v16, %v1110_v12  ;;  %v1085_v35 = vadd.f32 %v1084_v21, %v1015_v13 }
 0x3c3   :  { %v1317_v22 = vmul.f32 -1.442695, %v1185_v47  ;;  %v1114_v23 = vadd.f32 %v1085_v35, %v2411_v14 }
 0x3c5   :  { %1360 = vpow2.f32 %v1317_v22  ;;  %v1226_v43 = vadd.f32 %v1160_v62, %v1114_v23  ;;  %v1107_v54 = vpop.f32.mrf.mxu2 }
 0x3c6   :  { %v1136_v18 = vpop.f32.mrf.mxu3  ;;  %v1108_v47 = vadd.f32 %v1107_v54, %v2539_v4 }
 0x3c7   :  { %v1359_v24 = vpop.eup %1358  ;;  %v1320_v26 = vmul.f32 -1.442695, %v1226_v43  ;;  %v1137_v42 = vadd.f32 %v1136_v18, %v2405_v40 }
 0x3c8   :  { %v1233_v53 = vadd.f32 1.0, %v1359_v24  ;;  %v1179_v34 = vpop.f32.mrf.mxu1 }
 0x3c9   :  { %1362 = vpow2.f32 %v1320_v26  ;;  %v1186_v56 = vadd.f32 %v1137_v42, %v1113_v25  ;;  %v1180_v2 = vadd.f32 %v1179_v34, %v2422_v48  ;;  %v1115_v42 = vadd.f32 %v1108_v47, %v2425_v17 }
 0x3ca   :  { %1364 = vrcp.f32 %v1233_v53  ;;  %v1246_v36 = vand.u32 2147483648, %v1233_v53  ;;  %vm1240_vm6 = vweird.f32 %v1233_v53  ;;  %v1244_v6 = vand.u32 2147483647, %v1233_v53 }
 0x3cb   :  { %v1361_v28 = vpop.eup %1360  ;;  %v1318_v29 = vmul.f32 -1.442695, %v1186_v56 }
 0x3cc   :  { %v1193_v30 = vadd.f32 1.0, %v1361_v28  ;;  %v1247_v13 = vor.u32 1.1754944e-38, %v1246_v36  ;;  %vm1245_vm9 = vcmp.eq.f32.partialorder %v1244_v6, 8.507059e+37 }
 0x3cd   :  { %1366 = vpow2.f32 %v1318_v29 }
 0x3ce   :  { %1368 = vrcp.f32 %v1193_v30  ;;  %v1206_v50 = vand.u32 2147483648, %v1193_v30  ;;  %v1204_v52 = vand.u32 2147483647, %v1193_v30  ;;  %vm1200_vm2 = vweird.f32 %v1193_v30 }
 0x3cf   :  { %v1363_v0 = vpop.eup %1362 }
 0x3d0   :  { %v1365_v14 = vpop.eup %1364  ;;  %v2549_v31 = vadd.f32 1.0, %v1363_v0  ;;  %v1207_v45 = vor.u32 1.1754944e-38, %v1206_v50  ;;  %vm1205_vm5 = vcmp.eq.f32.partialorder %v1204_v52, 8.507059e+37  ;;  %v1182_v35 = vpop.f32.mrf.mxu1 }
 0x3d1   :  { %v1236_v32 = vmul.f32 %v1365_v14, %v1233_v53  ;;  %vm1241_vm4 = vweird.f32 %v1365_v14  ;;  %v1183_v43 = vadd.f32 %v1182_v35, %v2422_v48 }
 0x3d2   :  { %1370 = vrcp.f32 %v2549_v31  ;;  %vm2558_vm7 = vmor %vm1240_vm6, %vm1241_vm4  ;;  %v1261_v24 = vand.u32 2147483648, %v2549_v31  ;;  %vm1255_vm14 = vweird.f32 %v2549_v31  ;;  %v1259_v4 = vand.u32 2147483647, %v2549_v31 }
 0x3d3   :  { %v1367_v63 = vpop.eup %1366  ;;  %v1237_v33 = vsub.f32 1.0, %v1236_v32 }
 0x3d4   :  { %v1369_v19 = vpop.eup %1368  ;;  %v1194_v40 = vadd.f32 1.0, %v1367_v63  ;;  %vm1260_vm1 = vcmp.eq.f32.partialorder %v1259_v4, 8.507059e+37 }
 0x3d5   :  { %v1196_v39 = vmul.f32 %v1369_v19, %v1193_v30  ;;  %v1238_v60 = vmul.f32 %v1365_v14, %v1237_v33  ;;  %vm1201_vm0 = vweird.f32 %v1369_v19  ;;  %v1262_v30 = vor.u32 1.1754944e-38, %v1261_v24 }
 0x3d6   :  { %1372 = vrcp.f32 %v1194_v40  ;;  %vm1202_vm3 = vmor %vm1200_vm2, %vm1201_vm0  ;;  %v1221_v11 = vand.u32 2147483648, %v1194_v40  ;;  %v1219_v21 = vand.u32 2147483647, %v1194_v40  ;;  %vm1215_vm10 = vweird.f32 %v1194_v40 }
 0x3d7   :  { %v1197_v41 = vsub.f32 1.0, %v1196_v39  ;;  %v1239_v55 = vadd.f32 %v1365_v14, %v1238_v60 }
 0x3d8   :  { %v2552_v61 = vpop.eup %1370  ;;  %v1222_v22 = vor.u32 1.1754944e-38, %v1221_v11  ;;  %vm1220_vm13 = vcmp.eq.f32.partialorder %v1219_v21, 8.507059e+37 }
 0x3d9   :  { %v1251_v46 = vmul.f32 %v2552_v61, %v2549_v31  ;;  %v1198_v37 = vmul.f32 %v1369_v19, %v1197_v41  ;;  %v1243_v12 = vsel %vm2558_vm7, %v1365_v14, %v1239_v55  ;;  %vm1256_vm12 = vweird.f32 %v2552_v61 }
 0x3da   :  { %v1248_v62 = vsel %vm1245_vm9, %v1247_v13, %v1243_v12  ;;  %vm1257_vm15 = vmor %vm1255_vm14, %vm1256_vm12 }
 0x3db   :  { %v1199_v51 = vadd.f32 %v1369_v19, %v1198_v37  ;;  %v1252_v57 = vsub.f32 1.0, %v1251_v46  ;;  %v1271_v26 = vsub.f32 1.0, %v1248_v62 }
 0x3dc   :  { %v1373_v59 = vpop.eup %1372 }
 0x3dd   :  { %v1203_v1 = vsel %vm1202_vm3, %v1369_v19, %v1199_v51  ;;  %v1211_v3 = vmul.f32 %v1373_v59, %v1194_v40  ;;  %v1253_v15 = vmul.f32 %v2552_v61, %v1252_v57  ;;  %vm1216_vm8 = vweird.f32 %v1373_v59 }
 0x3de   :  { %v1208_v5 = vsel %vm1205_vm5, %v1207_v45, %v1203_v1  ;;  %vm1217_vm11 = vmor %vm1215_vm10, %vm1216_vm8  ;;  %v1273_v48 = vmul.f32 %v1271_v26, %v2443_v27 }
 0x3df   :  { %v1265_v8 = vmul.f32 %v1208_v5, %v1180_v2  ;;  %v1212_v9 = vsub.f32 1.0, %v1211_v3  ;;  %v1254_v23 = vadd.f32 %v2552_v61, %v1253_v15 }
 0x3e1   :  { %v1267_v16 = vadd.f32 %v1265_v8, %v1112_v7  ;;  %v1213_v20 = vmul.f32 %v1373_v59, %v1212_v9  ;;  %v1258_v56 = vsel %vm1257_vm15, %v2552_v61, %v1254_v23 }
 0x3e2   :  { %v1263_v14 = vsel %vm1260_vm1, %v1262_v30, %v1258_v56 }
 0x3e3   :  { %1374 = vtanh.f32 %v1267_v16  ;;  %v1214_v44 = vadd.f32 %v1373_v59, %v1213_v20  ;;  %v1272_v63 = vsub.f32 1.0, %v1263_v14 }
 0x3e5   :  { %v1218_v18 = vsel %vm1217_vm11, %v1373_v59, %v1214_v44  ;;  %v1274_v17 = vmul.f32 %v1272_v63, %v2450_v58 }
 0x3e6   :  { %v1223_v25 = vsel %vm1220_vm13, %v1222_v22, %v1218_v18 }
 0x3e7   :  { %v1266_v53 = vmul.f32 %v1223_v25, %v1183_v43 }
 0x3e9   :  { %v1375_v28 = vpop.eup %1374  ;;  %v1268_v29 = vadd.f32 %v1266_v53, %v1115_v42 }
 0x3ea   :  { %v1275_v0 = vmul.f32 %v1375_v28, %v1248_v62 }
 0x3eb   :  { %1376 = vtanh.f32 %v1268_v29 }
 0x3ec   :  { %v1277_v32 = vadd.f32 %v1275_v0, %v1273_v48 }
 0x3ee   :  { %1279 = vst [vmem:[#allocation19] sm:$0xff] %v1277_v32 }
 0x3f1   :  { %v1377_v31 = vpop.eup %1376 }
 0x3f2   :  { %v1276_v19 = vmul.f32 %v1377_v31, %v1263_v14 }
 0x3f4   :  { %v1278_v33 = vadd.f32 %v1276_v19, %v1274_v17 }
 0x3f6   :  { %1280 = vst [vmem:[#allocation19 + $0x8] sm:$0xff] %v1278_v33 }
 0x3f7   :  { %1293 = dma.vmem_to_hbm [thread:$0]  %s1286_s11, 256, %s1288_s1, [#allocation4], %s1683_s29, %s1683_s29, %s1684_s30  }
 0x3f8   :  { %1680 = dma.done.wait [#allocation4], 256  }
 0x3f9   :  { %1681 = vsyncadd [#allocation4], 4294967040 }
 0x3fa   :  { %1298 = vsyncpa [#allocation3], 1 }
 0x3fb   :  { %1299 = vsyncpa [#allocation6], 1 }
 0x3fc   :  { %1300 = vsyncpa [#allocation9], 1 }
 0x3fd   :  { %1301 = vsyncpa [#allocation12], 1 }
 0x3fe   :  { %1302 = vsyncpa [#allocation15], 1 }
 0x3ff   :  { %1303 = vsyncpa [#allocation18], 1 }
 0x400   :  { %1304 = vsyncpa [#allocation4], 1 }

</bundles_post_ra>
